<compile_context>
chip_gen: v6e
topology: v6e:2x2x1
jax: 0.10.0
libtpu: 0.0.40
codegen_flags: <defaults>
</compile_context>

<pallas_src>
import jax
import jax.numpy as jnp
from jax.experimental import pallas as pl
from jax.experimental.pallas import tpu as pltpu


def gru_kernel(x_ref, wih_ref, whh_ref, wlin_ref, blin_ref,
               out_ref, hid_ref, h_scr, gx_scr):
    """One grid step = one (batch tile, sequence chunk).  h carried in h_scr."""
    c = pl.program_id(1)
    nc = pl.num_programs(1)
    SC, BT, Ip = x_ref.shape
    Hp = whh_ref.shape[0]

    # Zero-init the carried hidden state at the first chunk of every batch tile.
    @pl.when(c == 0)
    def _():
        h_scr[...] = jnp.zeros_like(h_scr)

    # --- Stage 1: hoisted input projection for the whole chunk.
    # One bf16 MXU matmul, independent of the recurrence -> off the serial path.
    # (SC, BT) merge is copy-free since BT is a multiple of 8 (sublane-aligned).
    x_flat = x_ref[...].reshape(SC * BT, Ip)
    gx_scr[...] = jnp.dot(
        x_flat, wih_ref[...], preferred_element_type=jnp.float32
    ).reshape(SC, BT, 3 * Hp)

    # Hoist the resident recurrent weight read out of the per-step loop.
    whh = whh_ref[...]                                    # (Hp, 3Hp) bf16

    # --- Stage 2: recurrence.  SC <= 16 and static -> bounded full unroll, one
    # dependent matmul per step; gx_scr[t] is a whole-vreg time-major read.
    h = h_scr[...]                                        # (BT, Hp) f32
    for t in range(SC):
        gx = gx_scr[t]                                    # (BT, 3Hp) f32
        gh = jnp.dot(h.astype(whh.dtype), whh,
                     preferred_element_type=jnp.float32)  # (BT, 3Hp) f32
        # PyTorch gate order (r, z, n); each gate slice is lane-aligned (Hp = 128k).
        r = jax.nn.sigmoid(gx[:, :Hp] + gh[:, :Hp])
        z = jax.nn.sigmoid(gx[:, Hp:2 * Hp] + gh[:, Hp:2 * Hp])
        n = jnp.tanh(gx[:, 2 * Hp:] + r * gh[:, 2 * Hp:])
        h = (1.0 - z) * n + z * h
    h_scr[...] = h

    # Finalize on the last chunk: Dropout(p=0)/eval is identity, then Linear head.
    @pl.when(c == nc - 1)
    def _():
        hid_ref[...] = h
        out_ref[...] = (
            jnp.dot(h.astype(wlin_ref.dtype), wlin_ref[...],
                    preferred_element_type=jnp.float32)
            + blin_ref[...]
        )


def _round_up(n, m):
    return ((n + m - 1) // m) * m


def gru_classifier_forward(x, w_ih, w_hh, w_lin, b_lin,
                           *, compute_dtype=jnp.bfloat16):
    """x: (B, S, I) float32. Returns (out (B, O), hidden (1, B, H))."""
    B, S, I = x.shape
    H = w_hh.shape[1]
    O = w_lin.shape[0]

    # Lane (128) / sublane (8) alignment.
    Ip = _round_up(I, 128)
    Hp = _round_up(H, 128)
    Op = _round_up(O, 128)
    BT = min(_round_up(B, 8), 128)      # batch tile (multiple of 8)
    Bp = _round_up(B, BT)
    nb = Bp // BT

    # Sequence chunking: bounds unroll + VMEM residency, feeds the pipeline.
    SC = S if S <= 16 else 16
    S_pad = _round_up(S, SC)
    nc = S_pad // SC

    # Time-major x, FRONT-padded with zeros in time (exact no-op while h == 0),
    # zero-padded batch rows and input lanes, cast to bf16 for the MXU / DMA.
    x_tm = jnp.transpose(x, (1, 0, 2))                                  # (S, B, I)
    x_tm = jnp.pad(x_tm, ((S_pad - S, 0), (0, Bp - B), (0, Ip - I)))
    x_tm = x_tm.astype(compute_dtype)                                   # (S_pad, Bp, Ip)

    def pack_gate_weights(w, in_dim, in_pad):
        # torch layout (3H, in), gate order (r,z,n) -> (in_pad, 3*Hp): each gate gets
        # a zero-padded, lane-aligned Hp-wide slot so gate slices are full-vreg.
        wg = w.reshape(3, H, in_dim)
        wg = jnp.transpose(wg, (2, 0, 1))                               # (in, 3, H)
        wg = jnp.pad(wg, ((0, in_pad - in_dim), (0, 0), (0, Hp - H)))
        return wg.reshape(in_pad, 3 * Hp).astype(compute_dtype)

    wih_t = pack_gate_weights(w_ih, I, Ip)                              # (Ip, 3Hp) bf16
    whh_t = pack_gate_weights(w_hh, H, Hp)                              # (Hp, 3Hp) bf16
    wlin_t = jnp.pad(jnp.transpose(w_lin),
                     ((0, Hp - H), (0, Op - O))).astype(compute_dtype)  # (Hp, Op) bf16
    blin = jnp.pad(b_lin, (0, Op - O)).reshape(1, Op).astype(jnp.float32)

    out_p, hid_p = pl.pallas_call(
        gru_kernel,
        out_shape=(jax.ShapeDtypeStruct((Bp, Op), jnp.float32),
                   jax.ShapeDtypeStruct((Bp, Hp), jnp.float32)),
        grid_spec=pltpu.PrefetchScalarGridSpec(
            num_scalar_prefetch=0,
            grid=(nb, nc),                               # (batch tiles, seq chunks)
            in_specs=[
                pl.BlockSpec((SC, BT, Ip), lambda b, c: (c, b, 0)),   # x chunk (time-major)
                pl.BlockSpec((Ip, 3 * Hp), lambda b, c: (0, 0)),      # W_ih^T (gate-padded)
                pl.BlockSpec((Hp, 3 * Hp), lambda b, c: (0, 0)),      # W_hh^T (gate-padded)
                pl.BlockSpec((Hp, Op), lambda b, c: (0, 0)),          # W_lin^T
                pl.BlockSpec((1, Op), lambda b, c: (0, 0)),           # b_lin
            ],
            out_specs=[
                pl.BlockSpec((BT, Op), lambda b, c: (b, 0)),          # lane-dense head out
                pl.BlockSpec((BT, Hp), lambda b, c: (b, 0)),          # final hidden state
            ],
            scratch_shapes=[
                pltpu.VMEM((BT, Hp), jnp.float32),            # carried h across chunks
                pltpu.VMEM((SC, BT, 3 * Hp), jnp.float32),    # hoisted gx (time-major)
            ],
        ),
        compiler_params=pltpu.CompilerParams(
            dimension_semantics=("parallel", "arbitrary"),
            # Plenty for any chunked tiling here; at realistic shapes size the chunk
            # and this limit per generation (v7x: keep under ~48-56 MiB; v5e/v6e can
            # go toward ~100-110 MiB and take larger chunks).
            vmem_limit_bytes=32 * 1024 * 1024,
        ),
    )(x_tm, wih_t, whh_t, wlin_t, blin)

    out = out_p[:B, :O]
    hid = hid_p[:B, :H]
    return out, hid.reshape(1, B, H)


def gru_classifier_reference(x, w_ih, w_hh, w_lin, b_lin):
    """Pure-JAX f32 reference matching torch.nn.GRU(bias=False) + Linear."""
    B, S, I = x.shape
    H = w_hh.shape[1]
    h = jnp.zeros((B, H), jnp.float32)
    for t in range(S):
        x_t = x[:, t, :]
        gx = x_t @ w_ih.T
        gh = h @ w_hh.T
        r = jax.nn.sigmoid(gx[:, :H] + gh[:, :H])
        z = jax.nn.sigmoid(gx[:, H:2 * H] + gh[:, H:2 * H])
        n = jnp.tanh(gx[:, 2 * H:] + r * gh[:, 2 * H:])
        h = (1.0 - z) * n + z * h
    out = h @ w_lin.T + b_lin
    return out, h.reshape(1, B, H)


if __name__ == "__main__":
    # Small shapes consistent with the module.
    B, S, I, H, O = 2, 8, 16, 32, 8

    key = jax.random.PRNGKey(0)
    kx, k1, k2, k3, k4 = jax.random.split(key, 5)
    k_std = 1.0 / jnp.sqrt(H)

    x = jax.random.normal(kx, (B, S, I), dtype=jnp.float32)
    w_ih = jax.random.uniform(k1, (3 * H, I), jnp.float32, -k_std, k_std)   # weight_ih_l0
    w_hh = jax.random.uniform(k2, (3 * H, H), jnp.float32, -k_std, k_std)   # weight_hh_l0
    w_lin = jax.random.uniform(k3, (O, H), jnp.float32, -k_std, k_std)      # linear.weight
    b_lin = jax.random.uniform(k4, (O,), jnp.float32, -k_std, k_std)        # linear.bias

    out, hidden = jax.jit(gru_classifier_forward)(x, w_ih, w_hh, w_lin, b_lin)
    out = jax.block_until_ready(out)
    hidden = jax.block_until_ready(hidden)

    out_ref, hid_ref = gru_classifier_reference(x, w_ih, w_hh, w_lin, b_lin)
    assert out.shape == (B, O) and hidden.shape == (1, B, H)
    # bf16 inputs/weights (f32 accumulation & gate math) -> relaxed tolerance vs f32 ref.
    assert jnp.allclose(out, out_ref, atol=3e-2, rtol=3e-2)
    assert jnp.allclose(hidden, hid_ref, atol=3e-2, rtol=3e-2)

    print("KERNEL_OK")
</pallas_src>

<mosaic_0001>
module attributes {stable_mosaic.version = 11 : i64} {
  func.func @gru_kernel(%arg0: i32, %arg1: i32, %arg2: memref<8x8x128xbf16, #tpu.memory_space<vmem>>, %arg3: memref<128x384xbf16, #tpu.memory_space<vmem>>, %arg4: memref<128x384xbf16, #tpu.memory_space<vmem>>, %arg5: memref<128x128xbf16, #tpu.memory_space<vmem>>, %arg6: memref<1x128xf32, #tpu.memory_space<vmem>>, %arg7: memref<8x128xf32, #tpu.memory_space<vmem>>, %arg8: memref<8x128xf32, #tpu.memory_space<vmem>>, %arg9: memref<8x128xf32, #tpu.memory_space<vmem>>, %arg10: memref<8x8x384xf32, #tpu.memory_space<vmem>>) attributes {dimension_semantics = [#tpu.dimension_semantics<parallel>, #tpu.dimension_semantics<arbitrary>], iteration_bounds = array<i64: 1, 1>, scalar_prefetch = 0 : i64, scratch_operands = 2 : i64, tpu.core_type = #tpu.core_type<tc>, window_params = [{transform_indices = @transform_0, window_bounds = array<i64: 8, 8, 128>}, {pipeline_mode = #tpu.pipeline_mode<synchronous>, transform_indices = @transform_1, window_bounds = array<i64: 128, 384>}, {pipeline_mode = #tpu.pipeline_mode<synchronous>, transform_indices = @transform_2, window_bounds = array<i64: 128, 384>}, {pipeline_mode = #tpu.pipeline_mode<synchronous>, transform_indices = @transform_3, window_bounds = array<i64: 128, 128>}, {pipeline_mode = #tpu.pipeline_mode<synchronous>, transform_indices = @transform_4, window_bounds = array<i64: 1, 128>}, {transform_indices = @transform_5, window_bounds = array<i64: 8, 128>}, {transform_indices = @transform_6, window_bounds = array<i64: 8, 128>}]} {
    %c0_i32 = arith.constant 0 : i32
    %0 = arith.cmpi eq, %arg1, %c0_i32 : i32
    %1 = arith.extui %0 : i1 to i32
    %c0_i32_0 = arith.constant 0 : i32
    %2 = arith.cmpi ne, %1, %c0_i32_0 : i32
    scf.if %2 {
      %cst_65 = arith.constant 0.000000e+00 : f32
      %255 = vector.broadcast %cst_65 : f32 to vector<8x128xf32>
      %c0_66 = arith.constant 0 : index
      %c0_67 = arith.constant 0 : index
      %256 = vector.load %arg9[%c0_66, %c0_67] : memref<8x128xf32, #tpu.memory_space<vmem>>, vector<8x128xf32>
      tpu.vector_store %arg9[%c0_66, %c0_67], %255 {strides = array<i32>} : memref<8x128xf32, #tpu.memory_space<vmem>>, vector<8x128xf32>,
    } else {
    }
    %c0 = arith.constant 0 : index
    %c0_1 = arith.constant 0 : index
    %c0_2 = arith.constant 0 : index
    %3 = vector.load %arg2[%c0, %c0_1, %c0_2] : memref<8x8x128xbf16, #tpu.memory_space<vmem>>, vector<8x8x128xbf16>
    %4 = vector.shape_cast %3 : vector<8x8x128xbf16> to vector<64x128xbf16>
    %c0_3 = arith.constant 0 : index
    %c0_4 = arith.constant 0 : index
    %5 = vector.load %arg3[%c0_3, %c0_4] : memref<128x384xbf16, #tpu.memory_space<vmem>>, vector<128x384xbf16>
    %cst = arith.constant dense<0.000000e+00> : vector<64x384xf32>
    %6 = tpu.matmul %4, %5, %cst {dimension_numbers = #tpu.dot_dimension_numbers<[1], [0], [0], [1], [0, 0, 1, 1], [], []>} : vector<64x128xbf16>, vector<128x384xbf16>, vector<64x384xf32> -> vector<64x384xf32>
    %7 = vector.shape_cast %6 : vector<64x384xf32> to vector<8x8x384xf32>
    %c0_5 = arith.constant 0 : index
    %c0_6 = arith.constant 0 : index
    %c0_7 = arith.constant 0 : index
    %8 = vector.load %arg10[%c0_5, %c0_6, %c0_7] : memref<8x8x384xf32, #tpu.memory_space<vmem>>, vector<8x8x384xf32>
    tpu.vector_store %arg10[%c0_5, %c0_6, %c0_7], %7 {strides = array<i32>} : memref<8x8x384xf32, #tpu.memory_space<vmem>>, vector<8x8x384xf32>,
    %c0_8 = arith.constant 0 : index
    %c0_9 = arith.constant 0 : index
    %9 = vector.load %arg4[%c0_8, %c0_9] : memref<128x384xbf16, #tpu.memory_space<vmem>>, vector<128x384xbf16>
    %c0_10 = arith.constant 0 : index
    %c0_11 = arith.constant 0 : index
    %10 = vector.load %arg9[%c0_10, %c0_11] : memref<8x128xf32, #tpu.memory_space<vmem>>, vector<8x128xf32>
    %c0_12 = arith.constant 0 : index
    %c0_13 = arith.constant 0 : index
    %c0_14 = arith.constant 0 : index
    %11 = vector.load %arg10[%c0_12, %c0_13, %c0_14] : memref<8x8x384xf32, #tpu.memory_space<vmem>>, vector<1x8x384xf32>
    %12 = vector.shape_cast %11 : vector<1x8x384xf32> to vector<8x384xf32>
    %13 = arith.truncf %10 : vector<8x128xf32> to vector<8x128xbf16>
    %cst_15 = arith.constant dense<0.000000e+00> : vector<8x384xf32>
    %14 = tpu.matmul %13, %9, %cst_15 {dimension_numbers = #tpu.dot_dimension_numbers<[1], [0], [0], [1], [0, 0, 1, 1], [], []>} : vector<8x128xbf16>, vector<128x384xbf16>, vector<8x384xf32> -> vector<8x384xf32>
    %15 = vector.extract_strided_slice %12 {offsets = [0, 0], sizes = [8, 128], strides = [1, 1]} : vector<8x384xf32> to vector<8x128xf32>
    %16 = vector.extract_strided_slice %14 {offsets = [0, 0], sizes = [8, 128], strides = [1, 1]} : vector<8x384xf32> to vector<8x128xf32>
    %17 = arith.addf %15, %16 : vector<8x128xf32>
    %18 = arith.negf %17 : vector<8x128xf32>
    %19 = math.exp %18 : vector<8x128xf32>
    %cst_16 = arith.constant 1.000000e+00 : f32
    %20 = vector.broadcast %cst_16 : f32 to vector<8x128xf32>
    %21 = arith.addf %20, %19 : vector<8x128xf32>
    %22 = arith.divf %20, %21 : vector<8x128xf32>
    %23 = vector.extract_strided_slice %12 {offsets = [0, 128], sizes = [8, 128], strides = [1, 1]} : vector<8x384xf32> to vector<8x128xf32>
    %24 = vector.extract_strided_slice %14 {offsets = [0, 128], sizes = [8, 128], strides = [1, 1]} : vector<8x384xf32> to vector<8x128xf32>
    %25 = arith.addf %23, %24 : vector<8x128xf32>
    %26 = arith.negf %25 : vector<8x128xf32>
    %27 = math.exp %26 : vector<8x128xf32>
    %cst_17 = arith.constant 1.000000e+00 : f32
    %28 = vector.broadcast %cst_17 : f32 to vector<8x128xf32>
    %29 = arith.addf %28, %27 : vector<8x128xf32>
    %30 = arith.divf %28, %29 : vector<8x128xf32>
    %31 = vector.extract_strided_slice %12 {offsets = [0, 256], sizes = [8, 128], strides = [1, 1]} : vector<8x384xf32> to vector<8x128xf32>
    %32 = vector.extract_strided_slice %14 {offsets = [0, 256], sizes = [8, 128], strides = [1, 1]} : vector<8x384xf32> to vector<8x128xf32>
    %33 = arith.mulf %22, %32 : vector<8x128xf32>
    %34 = arith.addf %31, %33 : vector<8x128xf32>
    %35 = math.tanh %34 : vector<8x128xf32>
    %cst_18 = arith.constant 1.000000e+00 : f32
    %36 = vector.broadcast %cst_18 : f32 to vector<8x128xf32>
    %37 = arith.subf %36, %30 : vector<8x128xf32>
    %38 = arith.mulf %37, %35 : vector<8x128xf32>
    %39 = arith.mulf %30, %10 : vector<8x128xf32>
    %40 = arith.addf %38, %39 : vector<8x128xf32>
    %c1 = arith.constant 1 : index
    %c0_19 = arith.constant 0 : index
    %c0_20 = arith.constant 0 : index
    %41 = vector.load %arg10[%c1, %c0_19, %c0_20] : memref<8x8x384xf32, #tpu.memory_space<vmem>>, vector<1x8x384xf32>
    %42 = vector.shape_cast %41 : vector<1x8x384xf32> to vector<8x384xf32>
    %43 = arith.truncf %40 : vector<8x128xf32> to vector<8x128xbf16>
    %cst_21 = arith.constant dense<0.000000e+00> : vector<8x384xf32>
    %44 = tpu.matmul %43, %9, %cst_21 {dimension_numbers = #tpu.dot_dimension_numbers<[1], [0], [0], [1], [0, 0, 1, 1], [], []>} : vector<8x128xbf16>, vector<128x384xbf16>, vector<8x384xf32> -> vector<8x384xf32>
    %45 = vector.extract_strided_slice %42 {offsets = [0, 0], sizes = [8, 128], strides = [1, 1]} : vector<8x384xf32> to vector<8x128xf32>
    %46 = vector.extract_strided_slice %44 {offsets = [0, 0], sizes = [8, 128], strides = [1, 1]} : vector<8x384xf32> to vector<8x128xf32>
    %47 = arith.addf %45, %46 : vector<8x128xf32>
    %48 = arith.negf %47 : vector<8x128xf32>
    %49 = math.exp %48 : vector<8x128xf32>
    %cst_22 = arith.constant 1.000000e+00 : f32
    %50 = vector.broadcast %cst_22 : f32 to vector<8x128xf32>
    %51 = arith.addf %50, %49 : vector<8x128xf32>
    %52 = arith.divf %50, %51 : vector<8x128xf32>
    %53 = vector.extract_strided_slice %42 {offsets = [0, 128], sizes = [8, 128], strides = [1, 1]} : vector<8x384xf32> to vector<8x128xf32>
    %54 = vector.extract_strided_slice %44 {offsets = [0, 128], sizes = [8, 128], strides = [1, 1]} : vector<8x384xf32> to vector<8x128xf32>
    %55 = arith.addf %53, %54 : vector<8x128xf32>
    %56 = arith.negf %55 : vector<8x128xf32>
    %57 = math.exp %56 : vector<8x128xf32>
    %cst_23 = arith.constant 1.000000e+00 : f32
    %58 = vector.broadcast %cst_23 : f32 to vector<8x128xf32>
    %59 = arith.addf %58, %57 : vector<8x128xf32>
    %60 = arith.divf %58, %59 : vector<8x128xf32>
    %61 = vector.extract_strided_slice %42 {offsets = [0, 256], sizes = [8, 128], strides = [1, 1]} : vector<8x384xf32> to vector<8x128xf32>
    %62 = vector.extract_strided_slice %44 {offsets = [0, 256], sizes = [8, 128], strides = [1, 1]} : vector<8x384xf32> to vector<8x128xf32>
    %63 = arith.mulf %52, %62 : vector<8x128xf32>
    %64 = arith.addf %61, %63 : vector<8x128xf32>
    %65 = math.tanh %64 : vector<8x128xf32>
    %cst_24 = arith.constant 1.000000e+00 : f32
    %66 = vector.broadcast %cst_24 : f32 to vector<8x128xf32>
    %67 = arith.subf %66, %60 : vector<8x128xf32>
    %68 = arith.mulf %67, %65 : vector<8x128xf32>
    %69 = arith.mulf %60, %40 : vector<8x128xf32>
    %70 = arith.addf %68, %69 : vector<8x128xf32>
    %c2 = arith.constant 2 : index
    %c0_25 = arith.constant 0 : index
    %c0_26 = arith.constant 0 : index
    %71 = vector.load %arg10[%c2, %c0_25, %c0_26] : memref<8x8x384xf32, #tpu.memory_space<vmem>>, vector<1x8x384xf32>
    %72 = vector.shape_cast %71 : vector<1x8x384xf32> to vector<8x384xf32>
    %73 = arith.truncf %70 : vector<8x128xf32> to vector<8x128xbf16>
    %cst_27 = arith.constant dense<0.000000e+00> : vector<8x384xf32>
    %74 = tpu.matmul %73, %9, %cst_27 {dimension_numbers = #tpu.dot_dimension_numbers<[1], [0], [0], [1], [0, 0, 1, 1], [], []>} : vector<8x128xbf16>, vector<128x384xbf16>, vector<8x384xf32> -> vector<8x384xf32>
    %75 = vector.extract_strided_slice %72 {offsets = [0, 0], sizes = [8, 128], strides = [1, 1]} : vector<8x384xf32> to vector<8x128xf32>
    %76 = vector.extract_strided_slice %74 {offsets = [0, 0], sizes = [8, 128], strides = [1, 1]} : vector<8x384xf32> to vector<8x128xf32>
    %77 = arith.addf %75, %76 : vector<8x128xf32>
    %78 = arith.negf %77 : vector<8x128xf32>
    %79 = math.exp %78 : vector<8x128xf32>
    %cst_28 = arith.constant 1.000000e+00 : f32
    %80 = vector.broadcast %cst_28 : f32 to vector<8x128xf32>
    %81 = arith.addf %80, %79 : vector<8x128xf32>
    %82 = arith.divf %80, %81 : vector<8x128xf32>
    %83 = vector.extract_strided_slice %72 {offsets = [0, 128], sizes = [8, 128], strides = [1, 1]} : vector<8x384xf32> to vector<8x128xf32>
    %84 = vector.extract_strided_slice %74 {offsets = [0, 128], sizes = [8, 128], strides = [1, 1]} : vector<8x384xf32> to vector<8x128xf32>
    %85 = arith.addf %83, %84 : vector<8x128xf32>
    %86 = arith.negf %85 : vector<8x128xf32>
    %87 = math.exp %86 : vector<8x128xf32>
    %cst_29 = arith.constant 1.000000e+00 : f32
    %88 = vector.broadcast %cst_29 : f32 to vector<8x128xf32>
    %89 = arith.addf %88, %87 : vector<8x128xf32>
    %90 = arith.divf %88, %89 : vector<8x128xf32>
    %91 = vector.extract_strided_slice %72 {offsets = [0, 256], sizes = [8, 128], strides = [1, 1]} : vector<8x384xf32> to vector<8x128xf32>
    %92 = vector.extract_strided_slice %74 {offsets = [0, 256], sizes = [8, 128], strides = [1, 1]} : vector<8x384xf32> to vector<8x128xf32>
    %93 = arith.mulf %82, %92 : vector<8x128xf32>
    %94 = arith.addf %91, %93 : vector<8x128xf32>
    %95 = math.tanh %94 : vector<8x128xf32>
    %cst_30 = arith.constant 1.000000e+00 : f32
    %96 = vector.broadcast %cst_30 : f32 to vector<8x128xf32>
    %97 = arith.subf %96, %90 : vector<8x128xf32>
    %98 = arith.mulf %97, %95 : vector<8x128xf32>
    %99 = arith.mulf %90, %70 : vector<8x128xf32>
    %100 = arith.addf %98, %99 : vector<8x128xf32>
    %c3 = arith.constant 3 : index
    %c0_31 = arith.constant 0 : index
    %c0_32 = arith.constant 0 : index
    %101 = vector.load %arg10[%c3, %c0_31, %c0_32] : memref<8x8x384xf32, #tpu.memory_space<vmem>>, vector<1x8x384xf32>
    %102 = vector.shape_cast %101 : vector<1x8x384xf32> to vector<8x384xf32>
    %103 = arith.truncf %100 : vector<8x128xf32> to vector<8x128xbf16>
    %cst_33 = arith.constant dense<0.000000e+00> : vector<8x384xf32>
    %104 = tpu.matmul %103, %9, %cst_33 {dimension_numbers = #tpu.dot_dimension_numbers<[1], [0], [0], [1], [0, 0, 1, 1], [], []>} : vector<8x128xbf16>, vector<128x384xbf16>, vector<8x384xf32> -> vector<8x384xf32>
    %105 = vector.extract_strided_slice %102 {offsets = [0, 0], sizes = [8, 128], strides = [1, 1]} : vector<8x384xf32> to vector<8x128xf32>
    %106 = vector.extract_strided_slice %104 {offsets = [0, 0], sizes = [8, 128], strides = [1, 1]} : vector<8x384xf32> to vector<8x128xf32>
    %107 = arith.addf %105, %106 : vector<8x128xf32>
    %108 = arith.negf %107 : vector<8x128xf32>
    %109 = math.exp %108 : vector<8x128xf32>
    %cst_34 = arith.constant 1.000000e+00 : f32
    %110 = vector.broadcast %cst_34 : f32 to vector<8x128xf32>
    %111 = arith.addf %110, %109 : vector<8x128xf32>
    %112 = arith.divf %110, %111 : vector<8x128xf32>
    %113 = vector.extract_strided_slice %102 {offsets = [0, 128], sizes = [8, 128], strides = [1, 1]} : vector<8x384xf32> to vector<8x128xf32>
    %114 = vector.extract_strided_slice %104 {offsets = [0, 128], sizes = [8, 128], strides = [1, 1]} : vector<8x384xf32> to vector<8x128xf32>
    %115 = arith.addf %113, %114 : vector<8x128xf32>
    %116 = arith.negf %115 : vector<8x128xf32>
    %117 = math.exp %116 : vector<8x128xf32>
    %cst_35 = arith.constant 1.000000e+00 : f32
    %118 = vector.broadcast %cst_35 : f32 to vector<8x128xf32>
    %119 = arith.addf %118, %117 : vector<8x128xf32>
    %120 = arith.divf %118, %119 : vector<8x128xf32>
    %121 = vector.extract_strided_slice %102 {offsets = [0, 256], sizes = [8, 128], strides = [1, 1]} : vector<8x384xf32> to vector<8x128xf32>
    %122 = vector.extract_strided_slice %104 {offsets = [0, 256], sizes = [8, 128], strides = [1, 1]} : vector<8x384xf32> to vector<8x128xf32>
    %123 = arith.mulf %112, %122 : vector<8x128xf32>
    %124 = arith.addf %121, %123 : vector<8x128xf32>
    %125 = math.tanh %124 : vector<8x128xf32>
    %cst_36 = arith.constant 1.000000e+00 : f32
    %126 = vector.broadcast %cst_36 : f32 to vector<8x128xf32>
    %127 = arith.subf %126, %120 : vector<8x128xf32>
    %128 = arith.mulf %127, %125 : vector<8x128xf32>
    %129 = arith.mulf %120, %100 : vector<8x128xf32>
    %130 = arith.addf %128, %129 : vector<8x128xf32>
    %c4 = arith.constant 4 : index
    %c0_37 = arith.constant 0 : index
    %c0_38 = arith.constant 0 : index
    %131 = vector.load %arg10[%c4, %c0_37, %c0_38] : memref<8x8x384xf32, #tpu.memory_space<vmem>>, vector<1x8x384xf32>
    %132 = vector.shape_cast %131 : vector<1x8x384xf32> to vector<8x384xf32>
    %133 = arith.truncf %130 : vector<8x128xf32> to vector<8x128xbf16>
    %cst_39 = arith.constant dense<0.000000e+00> : vector<8x384xf32>
    %134 = tpu.matmul %133, %9, %cst_39 {dimension_numbers = #tpu.dot_dimension_numbers<[1], [0], [0], [1], [0, 0, 1, 1], [], []>} : vector<8x128xbf16>, vector<128x384xbf16>, vector<8x384xf32> -> vector<8x384xf32>
    %135 = vector.extract_strided_slice %132 {offsets = [0, 0], sizes = [8, 128], strides = [1, 1]} : vector<8x384xf32> to vector<8x128xf32>
    %136 = vector.extract_strided_slice %134 {offsets = [0, 0], sizes = [8, 128], strides = [1, 1]} : vector<8x384xf32> to vector<8x128xf32>
    %137 = arith.addf %135, %136 : vector<8x128xf32>
    %138 = arith.negf %137 : vector<8x128xf32>
    %139 = math.exp %138 : vector<8x128xf32>
    %cst_40 = arith.constant 1.000000e+00 : f32
    %140 = vector.broadcast %cst_40 : f32 to vector<8x128xf32>
    %141 = arith.addf %140, %139 : vector<8x128xf32>
    %142 = arith.divf %140, %141 : vector<8x128xf32>
    %143 = vector.extract_strided_slice %132 {offsets = [0, 128], sizes = [8, 128], strides = [1, 1]} : vector<8x384xf32> to vector<8x128xf32>
    %144 = vector.extract_strided_slice %134 {offsets = [0, 128], sizes = [8, 128], strides = [1, 1]} : vector<8x384xf32> to vector<8x128xf32>
    %145 = arith.addf %143, %144 : vector<8x128xf32>
    %146 = arith.negf %145 : vector<8x128xf32>
    %147 = math.exp %146 : vector<8x128xf32>
    %cst_41 = arith.constant 1.000000e+00 : f32
    %148 = vector.broadcast %cst_41 : f32 to vector<8x128xf32>
    %149 = arith.addf %148, %147 : vector<8x128xf32>
    %150 = arith.divf %148, %149 : vector<8x128xf32>
    %151 = vector.extract_strided_slice %132 {offsets = [0, 256], sizes = [8, 128], strides = [1, 1]} : vector<8x384xf32> to vector<8x128xf32>
    %152 = vector.extract_strided_slice %134 {offsets = [0, 256], sizes = [8, 128], strides = [1, 1]} : vector<8x384xf32> to vector<8x128xf32>
    %153 = arith.mulf %142, %152 : vector<8x128xf32>
    %154 = arith.addf %151, %153 : vector<8x128xf32>
    %155 = math.tanh %154 : vector<8x128xf32>
    %cst_42 = arith.constant 1.000000e+00 : f32
    %156 = vector.broadcast %cst_42 : f32 to vector<8x128xf32>
    %157 = arith.subf %156, %150 : vector<8x128xf32>
    %158 = arith.mulf %157, %155 : vector<8x128xf32>
    %159 = arith.mulf %150, %130 : vector<8x128xf32>
    %160 = arith.addf %158, %159 : vector<8x128xf32>
    %c5 = arith.constant 5 : index
    %c0_43 = arith.constant 0 : index
    %c0_44 = arith.constant 0 : index
    %161 = vector.load %arg10[%c5, %c0_43, %c0_44] : memref<8x8x384xf32, #tpu.memory_space<vmem>>, vector<1x8x384xf32>
    %162 = vector.shape_cast %161 : vector<1x8x384xf32> to vector<8x384xf32>
    %163 = arith.truncf %160 : vector<8x128xf32> to vector<8x128xbf16>
    %cst_45 = arith.constant dense<0.000000e+00> : vector<8x384xf32>
    %164 = tpu.matmul %163, %9, %cst_45 {dimension_numbers = #tpu.dot_dimension_numbers<[1], [0], [0], [1], [0, 0, 1, 1], [], []>} : vector<8x128xbf16>, vector<128x384xbf16>, vector<8x384xf32> -> vector<8x384xf32>
    %165 = vector.extract_strided_slice %162 {offsets = [0, 0], sizes = [8, 128], strides = [1, 1]} : vector<8x384xf32> to vector<8x128xf32>
    %166 = vector.extract_strided_slice %164 {offsets = [0, 0], sizes = [8, 128], strides = [1, 1]} : vector<8x384xf32> to vector<8x128xf32>
    %167 = arith.addf %165, %166 : vector<8x128xf32>
    %168 = arith.negf %167 : vector<8x128xf32>
    %169 = math.exp %168 : vector<8x128xf32>
    %cst_46 = arith.constant 1.000000e+00 : f32
    %170 = vector.broadcast %cst_46 : f32 to vector<8x128xf32>
    %171 = arith.addf %170, %169 : vector<8x128xf32>
    %172 = arith.divf %170, %171 : vector<8x128xf32>
    %173 = vector.extract_strided_slice %162 {offsets = [0, 128], sizes = [8, 128], strides = [1, 1]} : vector<8x384xf32> to vector<8x128xf32>
    %174 = vector.extract_strided_slice %164 {offsets = [0, 128], sizes = [8, 128], strides = [1, 1]} : vector<8x384xf32> to vector<8x128xf32>
    %175 = arith.addf %173, %174 : vector<8x128xf32>
    %176 = arith.negf %175 : vector<8x128xf32>
    %177 = math.exp %176 : vector<8x128xf32>
    %cst_47 = arith.constant 1.000000e+00 : f32
    %178 = vector.broadcast %cst_47 : f32 to vector<8x128xf32>
    %179 = arith.addf %178, %177 : vector<8x128xf32>
    %180 = arith.divf %178, %179 : vector<8x128xf32>
    %181 = vector.extract_strided_slice %162 {offsets = [0, 256], sizes = [8, 128], strides = [1, 1]} : vector<8x384xf32> to vector<8x128xf32>
    %182 = vector.extract_strided_slice %164 {offsets = [0, 256], sizes = [8, 128], strides = [1, 1]} : vector<8x384xf32> to vector<8x128xf32>
    %183 = arith.mulf %172, %182 : vector<8x128xf32>
    %184 = arith.addf %181, %183 : vector<8x128xf32>
    %185 = math.tanh %184 : vector<8x128xf32>
    %cst_48 = arith.constant 1.000000e+00 : f32
    %186 = vector.broadcast %cst_48 : f32 to vector<8x128xf32>
    %187 = arith.subf %186, %180 : vector<8x128xf32>
    %188 = arith.mulf %187, %185 : vector<8x128xf32>
    %189 = arith.mulf %180, %160 : vector<8x128xf32>
    %190 = arith.addf %188, %189 : vector<8x128xf32>
    %c6 = arith.constant 6 : index
    %c0_49 = arith.constant 0 : index
    %c0_50 = arith.constant 0 : index
    %191 = vector.load %arg10[%c6, %c0_49, %c0_50] : memref<8x8x384xf32, #tpu.memory_space<vmem>>, vector<1x8x384xf32>
    %192 = vector.shape_cast %191 : vector<1x8x384xf32> to vector<8x384xf32>
    %193 = arith.truncf %190 : vector<8x128xf32> to vector<8x128xbf16>
    %cst_51 = arith.constant dense<0.000000e+00> : vector<8x384xf32>
    %194 = tpu.matmul %193, %9, %cst_51 {dimension_numbers = #tpu.dot_dimension_numbers<[1], [0], [0], [1], [0, 0, 1, 1], [], []>} : vector<8x128xbf16>, vector<128x384xbf16>, vector<8x384xf32> -> vector<8x384xf32>
    %195 = vector.extract_strided_slice %192 {offsets = [0, 0], sizes = [8, 128], strides = [1, 1]} : vector<8x384xf32> to vector<8x128xf32>
    %196 = vector.extract_strided_slice %194 {offsets = [0, 0], sizes = [8, 128], strides = [1, 1]} : vector<8x384xf32> to vector<8x128xf32>
    %197 = arith.addf %195, %196 : vector<8x128xf32>
    %198 = arith.negf %197 : vector<8x128xf32>
    %199 = math.exp %198 : vector<8x128xf32>
    %cst_52 = arith.constant 1.000000e+00 : f32
    %200 = vector.broadcast %cst_52 : f32 to vector<8x128xf32>
    %201 = arith.addf %200, %199 : vector<8x128xf32>
    %202 = arith.divf %200, %201 : vector<8x128xf32>
    %203 = vector.extract_strided_slice %192 {offsets = [0, 128], sizes = [8, 128], strides = [1, 1]} : vector<8x384xf32> to vector<8x128xf32>
    %204 = vector.extract_strided_slice %194 {offsets = [0, 128], sizes = [8, 128], strides = [1, 1]} : vector<8x384xf32> to vector<8x128xf32>
    %205 = arith.addf %203, %204 : vector<8x128xf32>
    %206 = arith.negf %205 : vector<8x128xf32>
    %207 = math.exp %206 : vector<8x128xf32>
    %cst_53 = arith.constant 1.000000e+00 : f32
    %208 = vector.broadcast %cst_53 : f32 to vector<8x128xf32>
    %209 = arith.addf %208, %207 : vector<8x128xf32>
    %210 = arith.divf %208, %209 : vector<8x128xf32>
    %211 = vector.extract_strided_slice %192 {offsets = [0, 256], sizes = [8, 128], strides = [1, 1]} : vector<8x384xf32> to vector<8x128xf32>
    %212 = vector.extract_strided_slice %194 {offsets = [0, 256], sizes = [8, 128], strides = [1, 1]} : vector<8x384xf32> to vector<8x128xf32>
    %213 = arith.mulf %202, %212 : vector<8x128xf32>
    %214 = arith.addf %211, %213 : vector<8x128xf32>
    %215 = math.tanh %214 : vector<8x128xf32>
    %cst_54 = arith.constant 1.000000e+00 : f32
    %216 = vector.broadcast %cst_54 : f32 to vector<8x128xf32>
    %217 = arith.subf %216, %210 : vector<8x128xf32>
    %218 = arith.mulf %217, %215 : vector<8x128xf32>
    %219 = arith.mulf %210, %190 : vector<8x128xf32>
    %220 = arith.addf %218, %219 : vector<8x128xf32>
    %c7 = arith.constant 7 : index
    %c0_55 = arith.constant 0 : index
    %c0_56 = arith.constant 0 : index
    %221 = vector.load %arg10[%c7, %c0_55, %c0_56] : memref<8x8x384xf32, #tpu.memory_space<vmem>>, vector<1x8x384xf32>
    %222 = vector.shape_cast %221 : vector<1x8x384xf32> to vector<8x384xf32>
    %223 = arith.truncf %220 : vector<8x128xf32> to vector<8x128xbf16>
    %cst_57 = arith.constant dense<0.000000e+00> : vector<8x384xf32>
    %224 = tpu.matmul %223, %9, %cst_57 {dimension_numbers = #tpu.dot_dimension_numbers<[1], [0], [0], [1], [0, 0, 1, 1], [], []>} : vector<8x128xbf16>, vector<128x384xbf16>, vector<8x384xf32> -> vector<8x384xf32>
    %225 = vector.extract_strided_slice %222 {offsets = [0, 0], sizes = [8, 128], strides = [1, 1]} : vector<8x384xf32> to vector<8x128xf32>
    %226 = vector.extract_strided_slice %224 {offsets = [0, 0], sizes = [8, 128], strides = [1, 1]} : vector<8x384xf32> to vector<8x128xf32>
    %227 = arith.addf %225, %226 : vector<8x128xf32>
    %228 = arith.negf %227 : vector<8x128xf32>
    %229 = math.exp %228 : vector<8x128xf32>
    %cst_58 = arith.constant 1.000000e+00 : f32
    %230 = vector.broadcast %cst_58 : f32 to vector<8x128xf32>
    %231 = arith.addf %230, %229 : vector<8x128xf32>
    %232 = arith.divf %230, %231 : vector<8x128xf32>
    %233 = vector.extract_strided_slice %222 {offsets = [0, 128], sizes = [8, 128], strides = [1, 1]} : vector<8x384xf32> to vector<8x128xf32>
    %234 = vector.extract_strided_slice %224 {offsets = [0, 128], sizes = [8, 128], strides = [1, 1]} : vector<8x384xf32> to vector<8x128xf32>
    %235 = arith.addf %233, %234 : vector<8x128xf32>
    %236 = arith.negf %235 : vector<8x128xf32>
    %237 = math.exp %236 : vector<8x128xf32>
    %cst_59 = arith.constant 1.000000e+00 : f32
    %238 = vector.broadcast %cst_59 : f32 to vector<8x128xf32>
    %239 = arith.addf %238, %237 : vector<8x128xf32>
    %240 = arith.divf %238, %239 : vector<8x128xf32>
    %241 = vector.extract_strided_slice %222 {offsets = [0, 256], sizes = [8, 128], strides = [1, 1]} : vector<8x384xf32> to vector<8x128xf32>
    %242 = vector.extract_strided_slice %224 {offsets = [0, 256], sizes = [8, 128], strides = [1, 1]} : vector<8x384xf32> to vector<8x128xf32>
    %243 = arith.mulf %232, %242 : vector<8x128xf32>
    %244 = arith.addf %241, %243 : vector<8x128xf32>
    %245 = math.tanh %244 : vector<8x128xf32>
    %cst_60 = arith.constant 1.000000e+00 : f32
    %246 = vector.broadcast %cst_60 : f32 to vector<8x128xf32>
    %247 = arith.subf %246, %240 : vector<8x128xf32>
    %248 = arith.mulf %247, %245 : vector<8x128xf32>
    %249 = arith.mulf %240, %220 : vector<8x128xf32>
    %250 = arith.addf %248, %249 : vector<8x128xf32>
    %c0_61 = arith.constant 0 : index
    %c0_62 = arith.constant 0 : index
    %251 = vector.load %arg9[%c0_61, %c0_62] : memref<8x128xf32, #tpu.memory_space<vmem>>, vector<8x128xf32>
    tpu.vector_store %arg9[%c0_61, %c0_62], %250 {strides = array<i32>} : memref<8x128xf32, #tpu.memory_space<vmem>>, vector<8x128xf32>,
    %c0_i32_63 = arith.constant 0 : i32
    %252 = arith.cmpi eq, %arg1, %c0_i32_63 : i32
    %253 = arith.extui %252 : i1 to i32
    %c0_i32_64 = arith.constant 0 : i32
    %254 = arith.cmpi ne, %253, %c0_i32_64 : i32
    scf.if %254 {
      %c0_65 = arith.constant 0 : index
      %c0_66 = arith.constant 0 : index
      %255 = vector.load %arg8[%c0_65, %c0_66] : memref<8x128xf32, #tpu.memory_space<vmem>>, vector<8x128xf32>
      tpu.vector_store %arg8[%c0_65, %c0_66], %250 {strides = array<i32>} : memref<8x128xf32, #tpu.memory_space<vmem>>, vector<8x128xf32>,
      %256 = arith.truncf %250 : vector<8x128xf32> to vector<8x128xbf16>
      %c0_67 = arith.constant 0 : index
      %c0_68 = arith.constant 0 : index
      %257 = vector.load %arg5[%c0_67, %c0_68] : memref<128x128xbf16, #tpu.memory_space<vmem>>, vector<128x128xbf16>
      %cst_69 = arith.constant dense<0.000000e+00> : vector<8x128xf32>
      %258 = tpu.matmul %256, %257, %cst_69 {dimension_numbers = #tpu.dot_dimension_numbers<[1], [0], [0], [1], [0, 0, 1, 1], [], []>} : vector<8x128xbf16>, vector<128x128xbf16>, vector<8x128xf32> -> vector<8x128xf32>
      %c0_70 = arith.constant 0 : index
      %c0_71 = arith.constant 0 : index
      %259 = vector.load %arg6[%c0_70, %c0_71] : memref<1x128xf32, #tpu.memory_space<vmem>>, vector<1x128xf32>
      %260 = vector.broadcast %259 : vector<1x128xf32> to vector<8x128xf32>
      %261 = arith.addf %258, %260 : vector<8x128xf32>
      %c0_72 = arith.constant 0 : index
      %c0_73 = arith.constant 0 : index
      %262 = vector.load %arg7[%c0_72, %c0_73] : memref<8x128xf32, #tpu.memory_space<vmem>>, vector<8x128xf32>
      tpu.vector_store %arg7[%c0_72, %c0_73], %261 {strides = array<i32>} : memref<8x128xf32, #tpu.memory_space<vmem>>, vector<8x128xf32>,
    } else {
    }
    return
  }
  func.func @transform_0(%arg0: i32, %arg1: i32) -> (i32, i32, i32) {
    %c0_i32 = arith.constant 0 : i32
    %c0_i32_0 = arith.constant 0 : i32
    return %arg1, %arg0, %c0_i32 : i32, i32, i32
  }
  func.func @transform_1(%arg0: i32, %arg1: i32) -> (i32, i32) {
    %c0_i32 = arith.constant 0 : i32
    %c0_i32_0 = arith.constant 0 : i32
    %c0_i32_1 = arith.constant 0 : i32
    return %c0_i32, %c0_i32_0 : i32, i32
  }
  func.func @transform_2(%arg0: i32, %arg1: i32) -> (i32, i32) {
    %c0_i32 = arith.constant 0 : i32
    %c0_i32_0 = arith.constant 0 : i32
    %c0_i32_1 = arith.constant 0 : i32
    return %c0_i32, %c0_i32_0 : i32, i32
  }
  func.func @transform_3(%arg0: i32, %arg1: i32) -> (i32, i32) {
    %c0_i32 = arith.constant 0 : i32
    %c0_i32_0 = arith.constant 0 : i32
    %c0_i32_1 = arith.constant 0 : i32
    return %c0_i32, %c0_i32_0 : i32, i32
  }
  func.func @transform_4(%arg0: i32, %arg1: i32) -> (i32, i32) {
    %c0_i32 = arith.constant 0 : i32
    %c0_i32_0 = arith.constant 0 : i32
    %c0_i32_1 = arith.constant 0 : i32
    return %c0_i32, %c0_i32_0 : i32, i32
  }
  func.func @transform_5(%arg0: i32, %arg1: i32) -> (i32, i32) {
    %c0_i32 = arith.constant 0 : i32
    %c0_i32_0 = arith.constant 0 : i32
    return %arg0, %c0_i32 : i32, i32
  }
  func.func @transform_6(%arg0: i32, %arg1: i32) -> (i32, i32) {
    %c0_i32 = arith.constant 0 : i32
    %c0_i32_0 = arith.constant 0 : i32
    return %arg0, %c0_i32 : i32, i32
  }
}

</mosaic_0001>

<bundles_post_ra>
// kernel: gru_classifier_forward.1
= control target key start
LH: loop header
LB: loop body
LE: loop exit
PB: predicated region body
PF: predicated region fallthrough
CT: control target
= control target key end

     0   :  { %v2740_v1 = vmov 0   ;;  %v2742_v38 = vmov 0.0   ;;  %vm2064_vm0 = vmmov 0   ;;  %v2065_v52 = vmov 0.0|0.0   ;;  %s2733_s1 = inlined_call_operand.vmem [shape: bf16[128,384], index: 1, kind: input, shape index: {}]   ;;  %s2734_s0 = inlined_call_operand.vmem [shape: bf16[8,8,128], index: 0, kind: input, shape index: {}]   ;;  %s2735_s2 = inlined_call_operand.vmem [shape: bf16[128,384], index: 2, kind: input, shape index: {}]   ;;  %s2736_s3 = inlined_call_operand.vmem [shape: bf16[128,128], index: 3, kind: input, shape index: {}]   ;;  %s2737_s6 = inlined_call_operand.vmem [shape: f32[8,128], index: 6, kind: output, shape index: {1}]   ;;  %s2738_s4 = inlined_call_operand.vmem [shape: f32[1,128], index: 4, kind: input, shape index: {}]   ;;  %s2739_s5 = inlined_call_operand.vmem [shape: f32[8,128], index: 5, kind: output, shape index: {0}]  }
   0x1   :  { %v1902_v0 = vld [vmem:[%s2733_s1 + $0xac] ss:$12 sps:$4 sm:$0xff]   ;;  %252 = vmatprep.mubr.bf16.mxu0 %v2740_v1  ;;  %v1904_v2 = vld [vmem:[%s2733_s1 + $0xa8] ss:$12 sps:$4 sm:$0xff]   ;;  %v1907_v4 = vld [vmem:[%s2733_s1 + $0x90] ss:$12 sps:$4 sm:$0xff]  }
   0x2   :  { %220 = vmatprep.subr.bf16.mxu0 %v1902_v0  ;;  %v1905_v3 = vld [vmem:[%s2733_s1 + $0x94] ss:$12 sps:$4 sm:$0xff]   ;;  %v1908_v5 = vld [vmem:[%s2733_s1 + $0x7c] ss:$12 sps:$4 sm:$0xff]   ;;  %v1910_v6 = vld [vmem:[%s2733_s1 + $0x78] ss:$12 sps:$4 sm:$0xff]  }
   0x3   :  { %221 = vmatpush1.bf16.msra.mxu0 %v1904_v2  ;;  %v1911_v7 = vld [vmem:[%s2733_s1 + $0x64] ss:$12 sps:$4 sm:$0xff]   ;;  %v1913_v8 = vld [vmem:[%s2733_s1 + $0x60] ss:$12 sps:$4 sm:$0xff]   ;;  %v1916_v12 = vld [vmem:[%s2733_s1 + $0x48] ss:$12 sps:$4 sm:$0xff]  }
   0x4   :  { %222 = vmatprep.subr.bf16.mxu0 %v1905_v3  ;;  %v1914_v9 = vld [vmem:[%s2733_s1 + $0x4c] ss:$12 sps:$4 sm:$0xff]   ;;  %v1926_v10 = vld [vmem:[%s2733_s1 + $0xb0] ss:$12 sps:$4 sm:$0xff]   ;;  %v1927_v11 = vld [vmem:[%s2734_s0] sm:$0xff]  }
   0x5   :  { %1694 = vmatprep.subr.bf16.mxu1 %v1926_v10  ;;  %v1930_v13 = vld [vmem:[%s2733_s1 + $0x98] ss:$12 sps:$4 sm:$0xff]   ;;  %1710 = vmatprep.mubr.bf16.mxu1 %v1927_v11  ;;  %v1917_v14 = vld [vmem:[%s2733_s1 + $0x34] ss:$12 sps:$4 sm:$0xff]   ;;  %v1919_v16 = vld [vmem:[%s2733_s1 + $0x30] ss:$12 sps:$4 sm:$0xff]  }
   0x6   :  { %1695 = vmatpush3.bf16.msra.mxu1 %v1926_v10  ;;  %v1934_v15 = vld [vmem:[%s2733_s1 + $0x80] ss:$12 sps:$4 sm:$0xff]   ;;  %v1920_v17 = vld [vmem:[%s2733_s1 + $0x1c] ss:$12 sps:$4 sm:$0xff]   ;;  %v1922_v19 = vld [vmem:[%s2733_s1 + $0x18] ss:$12 sps:$4 sm:$0xff]  }
   0x7   :  { %223 = vmatpush1.bf16.msra.mxu0 %v1907_v4  ;;  %1696 = vmatprep.subr.bf16.mxu1 %v1930_v13  ;;  %v1939_v18 = vld [vmem:[%s2733_s1 + $0x68] ss:$12 sps:$4 sm:$0xff]   ;;  %v1943_v20 = vld [vmem:[%s2733_s1 + $0x50] ss:$12 sps:$4 sm:$0xff]   ;;  %v1925_v22 = vld [vmem:[%s2733_s1] ss:$12 sps:$4 sm:$0xff]  }
   0x8   :  { %224 = vmatprep.subr.bf16.mxu0 %v1908_v5  ;;  %v1923_v21 = vld [vmem:[%s2733_s1 + $0x4] ss:$12 sps:$4 sm:$0xff]   ;;  %v2174_v24 = vld [vmem:[%s2735_s2 + $0xac] ss:$12 sps:$4 sm:$0xff]   ;;  %v2179_v25 = vld [vmem:[%s2735_s2 + $0xa8] ss:$12 sps:$4 sm:$0xff]  }
   0x9   :  { %v1948_v23 = vld [vmem:[%s2733_s1 + $0x38] ss:$12 sps:$4 sm:$0xff]   ;;  %v2184_v26 = vld [vmem:[%s2735_s2 + $0x94] ss:$12 sps:$4 sm:$0xff]   ;;  %v2193_v28 = vld [vmem:[%s2735_s2 + $0x90] ss:$12 sps:$4 sm:$0xff]  }
   0xa   :  { %1697 = vmatpush3.bf16.msra.mxu1 %v1930_v13  ;;  %v1952_v27 = vld [vmem:[%s2733_s1 + $0x20] ss:$12 sps:$4 sm:$0xff]   ;;  %v1957_v29 = vld [vmem:[%s2733_s1 + $0x8] ss:$12 sps:$4 sm:$0xff]   ;;  %v2213_v32 = vld [vmem:[%s2735_s2 + $0x78] ss:$12 sps:$4 sm:$0xff]  }
   0xb   :  { %225 = vmatpush1.bf16.msra.mxu0 %v1910_v6  ;;  %1698 = vmatprep.subr.bf16.mxu1 %v1934_v15  ;;  %v2204_v30 = vld [vmem:[%s2735_s2 + $0x7c] ss:$12 sps:$4 sm:$0xff]   ;;  %v2219_v33 = vld [vmem:[%s2735_s2 + $0x64] ss:$12 sps:$4 sm:$0xff]   ;;  %v2230_v35 = vld [vmem:[%s2735_s2 + $0x60] ss:$12 sps:$4 sm:$0xff]  }
   0xc   :  { %226 = vmatprep.subr.bf16.mxu0 %v1911_v7  ;;  %v1936_v31 = vld [vmem:[%s2734_s0 + $0x8] sm:$0xff]   ;;  %v2224_v34 = vld [vmem:[%s2735_s2 + $0xb0] ss:$12 sps:$4 sm:$0xff]   ;;  %v2247_v39 = vld [vmem:[%s2735_s2 + $0x98] ss:$12 sps:$4 sm:$0xff]  }
   0xd   :  { %v1945_v36 = vld [vmem:[%s2734_s0 + $0x10] sm:$0xff]   ;;  %v2240_v37 = vld [vmem:[%s2735_s2 + $0x4c] ss:$12 sps:$4 sm:$0xff]   ;;  %v2282_v45 = vld [vmem:[%s2735_s2 + $0x1c] ss:$12 sps:$4 sm:$0xff]  }
   0xe   :  { %1699 = vmatpush3.bf16.msra.mxu1 %v1934_v15  ;;  %v2253_v40 = vld [vmem:[%s2735_s2 + $0x48] ss:$12 sps:$4 sm:$0xff]   ;;  %v2266_v42 = vld [vmem:[%s2735_s2 + $0x80] ss:$12 sps:$4 sm:$0xff]   ;;  %v2272_v43 = vld [vmem:[%s2735_s2 + $0x30] ss:$12 sps:$4 sm:$0xff]  }
   0xf   :  { %227 = vmatpush1.bf16.msra.mxu0 %v1913_v8  ;;  %1700 = vmatprep.subr.bf16.mxu1 %v1939_v18  ;;  %v2260_v41 = vld [vmem:[%s2735_s2 + $0x34] ss:$12 sps:$4 sm:$0xff]   ;;  %v1954_v44 = vld [vmem:[%s2734_s0 + $0x18] sm:$0xff]   ;;  %v2304_v48 = vld [vmem:[%s2735_s2 + $0x4] ss:$12 sps:$4 sm:$0xff]  }
  0x10   :  { %228 = vmatprep.subr.bf16.mxu0 %v1914_v9  ;;  %v2289_v46 = vld [vmem:[%s2735_s2 + $0x68] ss:$12 sps:$4 sm:$0xff]   ;;  %v2297_v47 = vld [vmem:[%s2735_s2 + $0x18] ss:$12 sps:$4 sm:$0xff]   ;;  %v2310_v49 = vld [vmem:[%s2735_s2 + $0x50] ss:$12 sps:$4 sm:$0xff]  }
  0x11   :  { %v2316_v50 = vld [vmem:[%s2735_s2] ss:$12 sps:$4 sm:$0xff]   ;;  %v2325_v51 = vld [vmem:[%s2735_s2 + $0x38] ss:$12 sps:$4 sm:$0xff]   ;;  %v2344_v54 = vld [vmem:[%s2735_s2 + $0x8] ss:$12 sps:$4 sm:$0xff]  }
  0x12   :  { %1701 = vmatpush3.bf16.msra.mxu1 %v1939_v18  ;;  %v2334_v53 = vld [vmem:[%s2735_s2 + $0x20] ss:$12 sps:$4 sm:$0xff]  }
  0x13   :  { %229 = vmatpush1.bf16.msra.mxu0 %v1916_v12  ;;  %1702 = vmatprep.subr.bf16.mxu1 %v1943_v20 }
  0x14   :  { %230 = vmatprep.subr.bf16.mxu0 %v1917_v14 }
  0x16   :  { %1703 = vmatpush3.bf16.msra.mxu1 %v1943_v20 }
  0x17   :  { %231 = vmatpush1.bf16.msra.mxu0 %v1919_v16  ;;  %1704 = vmatprep.subr.bf16.mxu1 %v1948_v23 }
  0x18   :  { %232 = vmatprep.subr.bf16.mxu0 %v1920_v17 }
  0x1a   :  { %1705 = vmatpush3.bf16.msra.mxu1 %v1948_v23 }
  0x1b   :  { %233 = vmatpush1.bf16.msra.mxu0 %v1922_v19  ;;  %1706 = vmatprep.subr.bf16.mxu1 %v1952_v27 }
  0x1c   :  { %234 = vmatprep.subr.bf16.mxu0 %v1923_v21 }
  0x1e   :  { %1707 = vmatpush3.bf16.msra.mxu1 %v1952_v27 }
  0x1f   :  { %235 = vmatpush1.bf16.msra.mxu0 %v1925_v22  ;;  %1708 = vmatprep.subr.bf16.mxu1 %v1957_v29 }
  0x20   :  { %547 = vmatprep.subr.bf16.mxu0 %v2174_v24 }
  0x22   :  { %253 = vmatmul.mubr.bf16.vlgmr.msra.gmra.mxu0 %v1927_v11  ;;  %1709 = vmatpush3.bf16.msra.mxu1 %v1957_v29 }
  0x23   :  { %548 = vmatpush1.bf16.msra.mxu0 %v2179_v25  ;;  %262 = vmatprep.mubr.bf16.mxu0 %v2740_v1 }
  0x24   :  { %549 = vmatprep.subr.bf16.mxu0 %v2184_v26  ;;  %1718 = vmatprep.subr.bf16.mxu1 %v2742_v38 }
  0x25   :  { %1711 = vmatmul.mubr.bf16.vlgmr.msra.gmra.mxu1 %v1936_v31 }
  0x26   :  { %1719 = vmatpush3.bf16.msra.mxu1 %v2224_v34  ;;  %1714 = vmatprep.mubr.bf16.mxu1 %v1945_v36 }
  0x27   :  { %550 = vmatpush1.bf16.msra.mxu0 %v2193_v28  ;;  %1720 = vmatprep.subr.bf16.mxu1 %v2742_v38 }
  0x28   :  { %551 = vmatprep.subr.bf16.mxu0 %v2204_v30 }
  0x2a   :  { %263 = vmatmul.mubr.bf16.gmra.mxu0 %v1936_v31  ;;  %1721 = vmatpush3.bf16.msra.mxu1 %v2247_v39 }
  0x2b   :  { %552 = vmatpush1.bf16.msra.mxu0 %v2213_v32  ;;  %272 = vmatprep.mubr.bf16.mxu0 %v2740_v1 }
  0x2c   :  { %553 = vmatprep.subr.bf16.mxu0 %v2219_v33  ;;  %1722 = vmatprep.subr.bf16.mxu1 %v2742_v38 }
  0x2d   :  { %1715 = vmatmul.mubr.bf16.gmra.mxu1 %v1954_v44 }
  0x2e   :  { %1723 = vmatpush3.bf16.msra.mxu1 %v2266_v42  ;;  %1734 = vmatprep.mubr.msk.bf16.mxu1 %vm2064_vm0, %v2742_v38 }
  0x2f   :  { %554 = vmatpush1.bf16.msra.mxu0 %v2230_v35  ;;  %1724 = vmatprep.subr.bf16.mxu1 %v2742_v38 }
  0x30   :  { %555 = vmatprep.subr.bf16.mxu0 %v2240_v37 }
  0x32   :  { %273 = vmatmul.mubr.bf16.gmra.mxu0 %v1945_v36  ;;  %1725 = vmatpush3.bf16.msra.mxu1 %v2289_v46 }
  0x33   :  { %556 = vmatpush1.bf16.msra.mxu0 %v2253_v40  ;;  %282 = vmatprep.mubr.bf16.mxu0 %v2740_v1 }
  0x34   :  { %557 = vmatprep.subr.bf16.mxu0 %v2260_v41  ;;  %1726 = vmatprep.subr.bf16.mxu1 %v2742_v38 }
  0x36   :  { %1727 = vmatpush3.bf16.msra.mxu1 %v2310_v49 }
  0x37   :  { %558 = vmatpush1.bf16.msra.mxu0 %v2272_v43  ;;  %1728 = vmatprep.subr.bf16.mxu1 %v2742_v38 }
  0x38   :  { %559 = vmatprep.subr.bf16.mxu0 %v2282_v45 }
  0x3a   :  { %283 = vmatmul.mubr.bf16.gmra.mxu0 %v1954_v44  ;;  %1729 = vmatpush3.bf16.msra.mxu1 %v2325_v51 }
  0x3b   :  { %560 = vmatpush1.bf16.msra.mxu0 %v2297_v47  ;;  %579 = vmatprep.mubr.bf16.mxu0 %v2740_v1 }
  0x3c   :  { %561 = vmatprep.subr.bf16.mxu0 %v2304_v48  ;;  %1730 = vmatprep.subr.bf16.mxu1 %v2742_v38 }
  0x3e   :  { %1731 = vmatpush3.bf16.msra.mxu1 %v2334_v53 }
  0x3f   :  { %562 = vmatpush1.bf16.msra.mxu0 %v2316_v50  ;;  %1732 = vmatprep.subr.bf16.mxu1 %v2742_v38 }
  0x40   :  { %654 = vmatprep.subr.bf16.mxu0 %v2174_v24 }
  0x42   :  { %580 = vmatmul.mubr.bf16.vlgmr.msra.gmra.mxu0 %v2065_v52  ;;  %1733 = vmatpush3.bf16.msra.mxu1 %v2344_v54 }
  0x43   :  { %655 = vmatpush1.bf16.msra.mxu0 %v2179_v25  ;;  %686 = vmatprep.mubr.bf16.mxu0 %v2740_v1 }
  0x44   :  { %656 = vmatprep.subr.bf16.mxu0 %v2184_v26  ;;  %1738 = vmatprep.subr.bf16.mxu1 %v2742_v38 }
  0x45   :  { %1735 = vmatmul.mubr.bf16.vlgmr.msra.gmra.mxu1 %v2065_v52 }
  0x46   :  { %1739 = vmatpush3.bf16.msra.mxu1 %v2224_v34  ;;  %1754 = vmatprep.mubr.msk.bf16.mxu1 %vm2064_vm0, %v2742_v38 }
  0x47   :  { %657 = vmatpush1.bf16.msra.mxu0 %v2193_v28  ;;  %1740 = vmatprep.subr.bf16.mxu1 %v2742_v38 }
  0x48   :  { %658 = vmatprep.subr.bf16.mxu0 %v2204_v30 }
  0x4a   :  { %1741 = vmatpush3.bf16.msra.mxu1 %v2247_v39 }
  0x4b   :  { %659 = vmatpush1.bf16.msra.mxu0 %v2213_v32  ;;  %1742 = vmatprep.subr.bf16.mxu1 %v2742_v38 }
  0x4c   :  { %660 = vmatprep.subr.bf16.mxu0 %v2219_v33 }
  0x4e   :  { %1743 = vmatpush3.bf16.msra.mxu1 %v2266_v42 }
  0x4f   :  { %661 = vmatpush1.bf16.msra.mxu0 %v2230_v35  ;;  %1744 = vmatprep.subr.bf16.mxu1 %v2742_v38 }
  0x50   :  { %662 = vmatprep.subr.bf16.mxu0 %v2240_v37 }
  0x52   :  { %1745 = vmatpush3.bf16.msra.mxu1 %v2289_v46 }
  0x53   :  { %663 = vmatpush1.bf16.msra.mxu0 %v2253_v40  ;;  %1746 = vmatprep.subr.bf16.mxu1 %v2742_v38 }
  0x54   :  { %664 = vmatprep.subr.bf16.mxu0 %v2260_v41 }
  0x56   :  { %1747 = vmatpush3.bf16.msra.mxu1 %v2310_v49 }
  0x57   :  { %665 = vmatpush1.bf16.msra.mxu0 %v2272_v43  ;;  %1748 = vmatprep.subr.bf16.mxu1 %v2742_v38 }
  0x58   :  { %666 = vmatprep.subr.bf16.mxu0 %v2282_v45 }
  0x5a   :  { %1749 = vmatpush3.bf16.msra.mxu1 %v2325_v51 }
  0x5b   :  { %667 = vmatpush1.bf16.msra.mxu0 %v2297_v47  ;;  %1750 = vmatprep.subr.bf16.mxu1 %v2742_v38 }
  0x5c   :  { %668 = vmatprep.subr.bf16.mxu0 %v2304_v48 }
  0x5e   :  { %1751 = vmatpush3.bf16.msra.mxu1 %v2334_v53 }
  0x5f   :  { %669 = vmatpush1.bf16.msra.mxu0 %v2316_v50  ;;  %1752 = vmatprep.subr.bf16.mxu1 %v2742_v38 }
  0x60   :  { %761 = vmatprep.subr.bf16.mxu0 %v2174_v24 }
  0x62   :  { %1753 = vmatpush3.bf16.msra.mxu1 %v2344_v54 }
  0x63   :  { %1758 = vmatprep.subr.bf16.mxu1 %v2742_v38 }
  0xe2   :  { %v254_v55 = vpop.f32.mrf.mxu0 }
  0xe4   :  { %v256_v56 = vpop.f32.mrf.mxu0 }
  0xe5   :  { %v2391_v62 = vpop.f32.mrf.mxu1 }
  0xe6   :  { %v2381_v57 = vpop.f32.mrf.mxu0 }
  0xe7   :  { %v327_v2 = vpop.f32.mrf.mxu1 }
  0xe8   :  { %v2383_v58 = vpop.f32.mrf.mxu0 }
  0xe9   :  { %v2401_v5 = vpop.f32.mrf.mxu1 }
  0xea   :  { %v2385_v59 = vpop.f32.mrf.mxu0 }
  0xeb   :  { %v2407_v8 = vpop.f32.mrf.mxu1 }
  0xec   :  { %v2387_v60 = vpop.f32.mrf.mxu0 }
  0xed   :  { %v2411_v10 = vpop.f32.mrf.mxu1 }
  0xee   :  { %v2389_v61 = vpop.f32.mrf.mxu0 }
  0xef   :  { %v2417_v13 = vpop.f32.mrf.mxu1 }
  0xf0   :  { %v2393_v63 = vpop.f32.mrf.mxu0 }
  0xf1   :  { %v2419_v18 = vpop.f32.mrf.mxu1 }
  0xf2   :  { %v2395_v0 = vpop.f32.mrf.mxu0  ;;  %2745 = vst [vmem:[#allocation5_spill] sm:$0xff] %v2419_v18 }
  0xf3   :  { %v2421_v22 = vpop.f32.mrf.mxu1 }
  0xf4   :  { %v2397_v3 = vpop.f32.mrf.mxu0 }
  0xf6   :  { %v2399_v4 = vpop.f32.mrf.mxu0 }
  0xf8   :  { %v2403_v6 = vpop.f32.mrf.mxu0 }
  0xfa   :  { %v2405_v7 = vpop.f32.mrf.mxu0 }
  0xfc   :  { %v2409_v9 = vpop.f32.mrf.mxu0 }
  0xfe   :  { %v2413_v11 = vpop.f32.mrf.mxu0 }
 0x100   :  { %v2415_v12 = vpop.f32.mrf.mxu0 }
 0x101   :  { %2744 = vst [vmem:[#allocation4_spill] sm:$0xff] %v2415_v12 }
 0x102   :  { %v581_v14 = vpop.f32.mrf.mxu0 }
 0x103   :  { %v628_v15 = vadd.f32 %v581_v14, %v254_v55 }
 0x104   :  { %v583_v16 = vpop.f32.mrf.mxu0 }
 0x105   :  { %v1576_v17 = vmul.f32 -1.442695, %v628_v15  ;;  %v635_v21 = vadd.f32 %v583_v16, %v256_v56  ;;  %v622_v27 = vpop.f32.mrf.mxu1 }
 0x106   :  { %v585_v19 = vpop.f32.mrf.mxu0 }
 0x107   :  { %1978 = vpow2.f32 %v1576_v17  ;;  %v1577_v23 = vmul.f32 -1.442695, %v635_v21  ;;  %v1736_v29 = vpop.f32.mrf.mxu1 }
 0x108   :  { %v586_v20 = vpop.f32.mrf.mxu0 }
 0x109   :  { %1980 = vpow2.f32 %v1577_v23  ;;  %v625_v31 = vpop.f32.mrf.mxu1 }
 0x10b   :  { %v1737_v36 = vpop.f32.mrf.mxu1 }
 0x114   :  { %v1979_v44 = vpop.eup %1978 }
 0x115   :  { %v632_v52 = vadd.f32 1.0, %v1979_v44 }
 0x116   :  { %v1981_v55 = vpop.eup %1980 }
 0x117   :  { %1982 = vrcp.f32 %v632_v52  ;;  %v639_v14 = vadd.f32 1.0, %v1981_v55 }
 0x119   :  { %1984 = vrcp.f32 %v639_v14 }
 0x124   :  { %v1983_v15 = vpop.eup %1982 }
 0x125   :  { %v642_v1 = vmul.f32 %v1983_v15, %v622_v27 }
 0x126   :  { %v1985_v17 = vpop.eup %1984 }
 0x127   :  { %v643_v19 = vadd.f32 %v642_v1, %v327_v2  ;;  %v645_v56 = vsub.f32 1.0, %v1985_v17  ;;  %v647_v21 = vmul.f32 0.0, %v1985_v17  ;;  %v2746_v1 = vmov 0.0  }
 0x128   :  { %v2747_v2 = vmov 0  }
 0x129   :  { %1986 = vtanh.f32 %v643_v19 }
 0x136   :  { %v1987_v16 = vpop.eup %1986 }
 0x137   :  { %v646_v20 = vmul.f32 %v1987_v16, %v645_v56 }
 0x139   :  { %v2423_v38 = vadd.f32 %v647_v21, %v646_v20 }
 0x13b   :  { %v653_v23 = vpack.c.bf16 %v2423_v38, %v2423_v38 }
 0x13d   :  { %687 = vmatmul.mubr.bf16.vlgmr.msra.gmra.mxu0 %v653_v23  ;;  %1755 = vmatmul.mubr.bf16.vlgmr.msra.gmra.mxu1 %v653_v23 }
 0x13e   :  { %762 = vmatpush1.bf16.msra.mxu0 %v2179_v25  ;;  %1759 = vmatpush3.bf16.msra.mxu1 %v2224_v34 }
 0x13f   :  { %763 = vmatprep.subr.bf16.mxu0 %v2184_v26  ;;  %1760 = vmatprep.subr.bf16.mxu1 %v2746_v1 }
 0x140   :  { %793 = vmatprep.mubr.bf16.mxu0 %v2747_v2  ;;  %1774 = vmatprep.mubr.msk.bf16.mxu1 %vm2064_vm0, %v2746_v1 }
 0x142   :  { %764 = vmatpush1.bf16.msra.mxu0 %v2193_v28  ;;  %1761 = vmatpush3.bf16.msra.mxu1 %v2247_v39 }
 0x143   :  { %765 = vmatprep.subr.bf16.mxu0 %v2204_v30  ;;  %1762 = vmatprep.subr.bf16.mxu1 %v2746_v1 }
 0x146   :  { %766 = vmatpush1.bf16.msra.mxu0 %v2213_v32  ;;  %1763 = vmatpush3.bf16.msra.mxu1 %v2266_v42 }
 0x147   :  { %767 = vmatprep.subr.bf16.mxu0 %v2219_v33  ;;  %1764 = vmatprep.subr.bf16.mxu1 %v2746_v1 }
 0x14a   :  { %768 = vmatpush1.bf16.msra.mxu0 %v2230_v35  ;;  %1765 = vmatpush3.bf16.msra.mxu1 %v2289_v46 }
 0x14b   :  { %769 = vmatprep.subr.bf16.mxu0 %v2240_v37  ;;  %1766 = vmatprep.subr.bf16.mxu1 %v2746_v1 }
 0x14e   :  { %770 = vmatpush1.bf16.msra.mxu0 %v2253_v40  ;;  %1767 = vmatpush3.bf16.msra.mxu1 %v2310_v49 }
 0x14f   :  { %771 = vmatprep.subr.bf16.mxu0 %v2260_v41  ;;  %1768 = vmatprep.subr.bf16.mxu1 %v2746_v1 }
 0x152   :  { %772 = vmatpush1.bf16.msra.mxu0 %v2272_v43  ;;  %1769 = vmatpush3.bf16.msra.mxu1 %v2325_v51 }
 0x153   :  { %773 = vmatprep.subr.bf16.mxu0 %v2282_v45  ;;  %1770 = vmatprep.subr.bf16.mxu1 %v2746_v1 }
 0x156   :  { %774 = vmatpush1.bf16.msra.mxu0 %v2297_v47  ;;  %1771 = vmatpush3.bf16.msra.mxu1 %v2334_v53 }
 0x157   :  { %775 = vmatprep.subr.bf16.mxu0 %v2304_v48  ;;  %1772 = vmatprep.subr.bf16.mxu1 %v2746_v1 }
 0x15a   :  { %776 = vmatpush1.bf16.msra.mxu0 %v2316_v50  ;;  %1773 = vmatpush3.bf16.msra.mxu1 %v2344_v54 }
 0x15b   :  { %868 = vmatprep.subr.bf16.mxu0 %v2174_v24  ;;  %1778 = vmatprep.subr.bf16.mxu1 %v2746_v1 }
 0x1fd   :  { %v688_v27 = vpop.f32.mrf.mxu0  ;;  %v729_v29 = vpop.f32.mrf.mxu1 }
 0x1fe   :  { %v735_v31 = vadd.f32 %v688_v27, %v2381_v57 }
 0x1ff   :  { %v690_v36 = vpop.f32.mrf.mxu0  ;;  %v1756_v44 = vpop.f32.mrf.mxu1 }
 0x200   :  { %v1578_v52 = vmul.f32 -1.442695, %v735_v31  ;;  %v742_v17 = vadd.f32 %v690_v36, %v2383_v58 }
 0x201   :  { %v692_v55 = vpop.f32.mrf.mxu0  ;;  %v732_v14 = vpop.f32.mrf.mxu1 }
 0x202   :  { %1988 = vpow2.f32 %v1578_v52  ;;  %v1579_v56 = vmul.f32 -1.442695, %v742_v17 }
 0x203   :  { %v693_v15 = vpop.f32.mrf.mxu0  ;;  %v1757_v19 = vpop.f32.mrf.mxu1 }
 0x204   :  { %1990 = vpow2.f32 %v1579_v56 }
 0x20f   :  { %v1989_v16 = vpop.eup %1988 }
 0x210   :  { %v739_v20 = vadd.f32 1.0, %v1989_v16 }
 0x211   :  { %v1991_v21 = vpop.eup %1990 }
 0x212   :  { %1992 = vrcp.f32 %v739_v20  ;;  %v746_v23 = vadd.f32 1.0, %v1991_v21 }
 0x214   :  { %1994 = vrcp.f32 %v746_v23 }
 0x21f   :  { %v1993_v18 = vpop.eup %1992 }
 0x220   :  { %v749_v12 = vmul.f32 %v1993_v18, %v729_v29 }
 0x221   :  { %v1995_v27 = vpop.eup %1994 }
 0x222   :  { %v750_v57 = vadd.f32 %v749_v12, %v2407_v8  ;;  %v752_v31 = vsub.f32 1.0, %v1995_v27  ;;  %v754_v55 = vmul.f32 %v1995_v27, %v2423_v38 }
 0x224   :  { %1996 = vtanh.f32 %v750_v57 }
 0x231   :  { %v1997_v44 = vpop.eup %1996 }
 0x232   :  { %v753_v52 = vmul.f32 %v1997_v44, %v752_v31 }
 0x234   :  { %v2466_v58 = vadd.f32 %v754_v55, %v753_v52 }
 0x236   :  { %v760_v36 = vpack.c.bf16 %v2466_v58, %v2466_v58 }
 0x238   :  { %794 = vmatmul.mubr.bf16.vlgmr.msra.gmra.mxu0 %v760_v36  ;;  %1775 = vmatmul.mubr.bf16.vlgmr.msra.gmra.mxu1 %v760_v36 }
 0x239   :  { %869 = vmatpush1.bf16.msra.mxu0 %v2179_v25  ;;  %1779 = vmatpush3.bf16.msra.mxu1 %v2224_v34 }
 0x23a   :  { %870 = vmatprep.subr.bf16.mxu0 %v2184_v26  ;;  %1780 = vmatprep.subr.bf16.mxu1 %v2746_v1 }
 0x23b   :  { %900 = vmatprep.mubr.bf16.mxu0 %v2747_v2  ;;  %1794 = vmatprep.mubr.msk.bf16.mxu1 %vm2064_vm0, %v2746_v1 }
 0x23d   :  { %871 = vmatpush1.bf16.msra.mxu0 %v2193_v28  ;;  %1781 = vmatpush3.bf16.msra.mxu1 %v2247_v39 }
 0x23e   :  { %872 = vmatprep.subr.bf16.mxu0 %v2204_v30  ;;  %1782 = vmatprep.subr.bf16.mxu1 %v2746_v1 }
 0x241   :  { %873 = vmatpush1.bf16.msra.mxu0 %v2213_v32  ;;  %1783 = vmatpush3.bf16.msra.mxu1 %v2266_v42 }
 0x242   :  { %874 = vmatprep.subr.bf16.mxu0 %v2219_v33  ;;  %1784 = vmatprep.subr.bf16.mxu1 %v2746_v1 }
 0x245   :  { %875 = vmatpush1.bf16.msra.mxu0 %v2230_v35  ;;  %1785 = vmatpush3.bf16.msra.mxu1 %v2289_v46 }
 0x246   :  { %876 = vmatprep.subr.bf16.mxu0 %v2240_v37  ;;  %1786 = vmatprep.subr.bf16.mxu1 %v2746_v1 }
 0x249   :  { %877 = vmatpush1.bf16.msra.mxu0 %v2253_v40  ;;  %1787 = vmatpush3.bf16.msra.mxu1 %v2310_v49 }
 0x24a   :  { %878 = vmatprep.subr.bf16.mxu0 %v2260_v41  ;;  %1788 = vmatprep.subr.bf16.mxu1 %v2746_v1 }
 0x24d   :  { %879 = vmatpush1.bf16.msra.mxu0 %v2272_v43  ;;  %1789 = vmatpush3.bf16.msra.mxu1 %v2325_v51 }
 0x24e   :  { %880 = vmatprep.subr.bf16.mxu0 %v2282_v45  ;;  %1790 = vmatprep.subr.bf16.mxu1 %v2746_v1 }
 0x251   :  { %881 = vmatpush1.bf16.msra.mxu0 %v2297_v47  ;;  %1791 = vmatpush3.bf16.msra.mxu1 %v2334_v53 }
 0x252   :  { %882 = vmatprep.subr.bf16.mxu0 %v2304_v48  ;;  %1792 = vmatprep.subr.bf16.mxu1 %v2746_v1 }
 0x255   :  { %883 = vmatpush1.bf16.msra.mxu0 %v2316_v50  ;;  %1793 = vmatpush3.bf16.msra.mxu1 %v2344_v54 }
 0x256   :  { %975 = vmatprep.subr.bf16.mxu0 %v2174_v24  ;;  %1798 = vmatprep.subr.bf16.mxu1 %v2746_v1 }
 0x2f8   :  { %v795_v38 = vpop.f32.mrf.mxu0  ;;  %v836_v8 = vpop.f32.mrf.mxu1 }
 0x2f9   :  { %v842_v12 = vadd.f32 %v795_v38, %v2385_v59 }
 0x2fa   :  { %v797_v18 = vpop.f32.mrf.mxu0  ;;  %v1776_v29 = vpop.f32.mrf.mxu1 }
 0x2fb   :  { %v1580_v14 = vmul.f32 -1.442695, %v842_v12  ;;  %v849_v16 = vadd.f32 %v797_v18, %v2387_v60 }
 0x2fc   :  { %v799_v15 = vpop.f32.mrf.mxu0  ;;  %v839_v19 = vpop.f32.mrf.mxu1 }
 0x2fd   :  { %1998 = vpow2.f32 %v1580_v14  ;;  %v1581_v20 = vmul.f32 -1.442695, %v849_v16 }
 0x2fe   :  { %v800_v17 = vpop.f32.mrf.mxu0  ;;  %v1777_v56 = vpop.f32.mrf.mxu1 }
 0x2ff   :  { %2000 = vpow2.f32 %v1581_v20 }
 0x30a   :  { %v1999_v21 = vpop.eup %1998 }
 0x30b   :  { %v846_v23 = vadd.f32 1.0, %v1999_v21 }
 0x30c   :  { %v2001_v57 = vpop.eup %2000 }
 0x30d   :  { %2002 = vrcp.f32 %v846_v23  ;;  %v853_v27 = vadd.f32 1.0, %v2001_v57 }
 0x30f   :  { %2004 = vrcp.f32 %v853_v27 }
 0x31a   :  { %v2003_v31 = vpop.eup %2002 }
 0x31b   :  { %v856_v44 = vmul.f32 %v2003_v31, %v836_v8 }
 0x31c   :  { %v2005_v52 = vpop.eup %2004 }
 0x31d   :  { %v857_v59 = vadd.f32 %v2391_v62, %v856_v44  ;;  %v859_v55 = vsub.f32 1.0, %v2005_v52  ;;  %v861_v12 = vmul.f32 %v2005_v52, %v2466_v58 }
 0x31f   :  { %2006 = vtanh.f32 %v857_v59 }
 0x32c   :  { %v2007_v36 = vpop.eup %2006 }
 0x32d   :  { %v860_v38 = vmul.f32 %v2007_v36, %v859_v55 }
 0x32f   :  { %v2509_v60 = vadd.f32 %v861_v12, %v860_v38 }
 0x331   :  { %v867_v18 = vpack.c.bf16 %v2509_v60, %v2509_v60 }
 0x333   :  { %901 = vmatmul.mubr.bf16.vlgmr.msra.gmra.mxu0 %v867_v18  ;;  %1795 = vmatmul.mubr.bf16.vlgmr.msra.gmra.mxu1 %v867_v18 }
 0x334   :  { %976 = vmatpush1.bf16.msra.mxu0 %v2179_v25  ;;  %1799 = vmatpush3.bf16.msra.mxu1 %v2224_v34 }
 0x335   :  { %977 = vmatprep.subr.bf16.mxu0 %v2184_v26  ;;  %1800 = vmatprep.subr.bf16.mxu1 %v2746_v1 }
 0x336   :  { %1007 = vmatprep.mubr.bf16.mxu0 %v2747_v2  ;;  %1814 = vmatprep.mubr.msk.bf16.mxu1 %vm2064_vm0, %v2746_v1 }
 0x338   :  { %978 = vmatpush1.bf16.msra.mxu0 %v2193_v28  ;;  %1801 = vmatpush3.bf16.msra.mxu1 %v2247_v39 }
 0x339   :  { %979 = vmatprep.subr.bf16.mxu0 %v2204_v30  ;;  %1802 = vmatprep.subr.bf16.mxu1 %v2746_v1 }
 0x33c   :  { %980 = vmatpush1.bf16.msra.mxu0 %v2213_v32  ;;  %1803 = vmatpush3.bf16.msra.mxu1 %v2266_v42 }
 0x33d   :  { %981 = vmatprep.subr.bf16.mxu0 %v2219_v33  ;;  %1804 = vmatprep.subr.bf16.mxu1 %v2746_v1 }
 0x340   :  { %982 = vmatpush1.bf16.msra.mxu0 %v2230_v35  ;;  %1805 = vmatpush3.bf16.msra.mxu1 %v2289_v46 }
 0x341   :  { %983 = vmatprep.subr.bf16.mxu0 %v2240_v37  ;;  %1806 = vmatprep.subr.bf16.mxu1 %v2746_v1 }
 0x344   :  { %984 = vmatpush1.bf16.msra.mxu0 %v2253_v40  ;;  %1807 = vmatpush3.bf16.msra.mxu1 %v2310_v49 }
 0x345   :  { %985 = vmatprep.subr.bf16.mxu0 %v2260_v41  ;;  %1808 = vmatprep.subr.bf16.mxu1 %v2746_v1 }
 0x348   :  { %986 = vmatpush1.bf16.msra.mxu0 %v2272_v43  ;;  %1809 = vmatpush3.bf16.msra.mxu1 %v2325_v51 }
 0x349   :  { %987 = vmatprep.subr.bf16.mxu0 %v2282_v45  ;;  %1810 = vmatprep.subr.bf16.mxu1 %v2746_v1 }
 0x34c   :  { %988 = vmatpush1.bf16.msra.mxu0 %v2297_v47  ;;  %1811 = vmatpush3.bf16.msra.mxu1 %v2334_v53 }
 0x34d   :  { %989 = vmatprep.subr.bf16.mxu0 %v2304_v48  ;;  %1812 = vmatprep.subr.bf16.mxu1 %v2746_v1 }
 0x350   :  { %990 = vmatpush1.bf16.msra.mxu0 %v2316_v50  ;;  %1813 = vmatpush3.bf16.msra.mxu1 %v2344_v54 }
 0x351   :  { %1082 = vmatprep.subr.bf16.mxu0 %v2174_v24  ;;  %1818 = vmatprep.subr.bf16.mxu1 %v2746_v1 }
 0x3f3   :  { %v902_v62 = vpop.f32.mrf.mxu0  ;;  %v943_v58 = vpop.f32.mrf.mxu1 }
 0x3f4   :  { %v949_v8 = vadd.f32 %v902_v62, %v2389_v61 }
 0x3f5   :  { %v904_v29 = vpop.f32.mrf.mxu0  ;;  %v1796_v14 = vpop.f32.mrf.mxu1 }
 0x3f6   :  { %v1582_v15 = vmul.f32 -1.442695, %v949_v8  ;;  %v956_v20 = vadd.f32 %v904_v29, %v2393_v63 }
 0x3f7   :  { %v906_v19 = vpop.f32.mrf.mxu0  ;;  %v946_v17 = vpop.f32.mrf.mxu1 }
 0x3f8   :  { %2008 = vpow2.f32 %v1582_v15  ;;  %v1583_v21 = vmul.f32 -1.442695, %v956_v20 }
 0x3f9   :  { %v907_v56 = vpop.f32.mrf.mxu0  ;;  %v1797_v16 = vpop.f32.mrf.mxu1 }
 0x3fa   :  { %2010 = vpow2.f32 %v1583_v21 }
 0x405   :  { %v2009_v23 = vpop.eup %2008 }
 0x406   :  { %v953_v57 = vadd.f32 1.0, %v2009_v23 }
 0x407   :  { %v2011_v27 = vpop.eup %2010 }
 0x408   :  { %2012 = vrcp.f32 %v953_v57  ;;  %v960_v31 = vadd.f32 1.0, %v2011_v27 }
 0x40a   :  { %2014 = vrcp.f32 %v960_v31 }
 0x415   :  { %v2013_v44 = vpop.eup %2012 }
 0x416   :  { %v963_v59 = vmul.f32 %v2013_v44, %v943_v58 }
 0x417   :  { %v2015_v52 = vpop.eup %2014 }
 0x418   :  { %v964_v61 = vadd.f32 %v2401_v5, %v963_v59  ;;  %v966_v55 = vsub.f32 1.0, %v2015_v52  ;;  %v968_v12 = vmul.f32 %v2015_v52, %v2509_v60 }
 0x41a   :  { %2016 = vtanh.f32 %v964_v61 }
 0x427   :  { %v2017_v36 = vpop.eup %2016 }
 0x428   :  { %v967_v38 = vmul.f32 %v2017_v36, %v966_v55 }
 0x42a   :  { %v2552_v63 = vadd.f32 %v968_v12, %v967_v38 }
 0x42c   :  { %v974_v18 = vpack.c.bf16 %v2552_v63, %v2552_v63 }
 0x42e   :  { %1008 = vmatmul.mubr.bf16.vlgmr.msra.gmra.mxu0 %v974_v18  ;;  %1815 = vmatmul.mubr.bf16.vlgmr.msra.gmra.mxu1 %v974_v18 }
 0x42f   :  { %1083 = vmatpush1.bf16.msra.mxu0 %v2179_v25  ;;  %1819 = vmatpush3.bf16.msra.mxu1 %v2224_v34 }
 0x430   :  { %1084 = vmatprep.subr.bf16.mxu0 %v2184_v26  ;;  %1820 = vmatprep.subr.bf16.mxu1 %v2746_v1 }
 0x431   :  { %1114 = vmatprep.mubr.bf16.mxu0 %v2747_v2  ;;  %1834 = vmatprep.mubr.msk.bf16.mxu1 %vm2064_vm0, %v2746_v1 }
 0x433   :  { %1085 = vmatpush1.bf16.msra.mxu0 %v2193_v28  ;;  %1821 = vmatpush3.bf16.msra.mxu1 %v2247_v39 }
 0x434   :  { %1086 = vmatprep.subr.bf16.mxu0 %v2204_v30  ;;  %1822 = vmatprep.subr.bf16.mxu1 %v2746_v1 }
 0x437   :  { %1087 = vmatpush1.bf16.msra.mxu0 %v2213_v32  ;;  %1823 = vmatpush3.bf16.msra.mxu1 %v2266_v42 }
 0x438   :  { %1088 = vmatprep.subr.bf16.mxu0 %v2219_v33  ;;  %1824 = vmatprep.subr.bf16.mxu1 %v2746_v1 }
 0x43b   :  { %1089 = vmatpush1.bf16.msra.mxu0 %v2230_v35  ;;  %1825 = vmatpush3.bf16.msra.mxu1 %v2289_v46 }
 0x43c   :  { %1090 = vmatprep.subr.bf16.mxu0 %v2240_v37  ;;  %1826 = vmatprep.subr.bf16.mxu1 %v2746_v1 }
 0x43f   :  { %1091 = vmatpush1.bf16.msra.mxu0 %v2253_v40  ;;  %1827 = vmatpush3.bf16.msra.mxu1 %v2310_v49 }
 0x440   :  { %1092 = vmatprep.subr.bf16.mxu0 %v2260_v41  ;;  %1828 = vmatprep.subr.bf16.mxu1 %v2746_v1 }
 0x443   :  { %1093 = vmatpush1.bf16.msra.mxu0 %v2272_v43  ;;  %1829 = vmatpush3.bf16.msra.mxu1 %v2325_v51 }
 0x444   :  { %1094 = vmatprep.subr.bf16.mxu0 %v2282_v45  ;;  %1830 = vmatprep.subr.bf16.mxu1 %v2746_v1 }
 0x447   :  { %1095 = vmatpush1.bf16.msra.mxu0 %v2297_v47  ;;  %1831 = vmatpush3.bf16.msra.mxu1 %v2334_v53 }
 0x448   :  { %1096 = vmatprep.subr.bf16.mxu0 %v2304_v48  ;;  %1832 = vmatprep.subr.bf16.mxu1 %v2746_v1 }
 0x44b   :  { %1097 = vmatpush1.bf16.msra.mxu0 %v2316_v50  ;;  %1833 = vmatpush3.bf16.msra.mxu1 %v2344_v54 }
 0x44c   :  { %1189 = vmatprep.subr.bf16.mxu0 %v2174_v24  ;;  %1838 = vmatprep.subr.bf16.mxu1 %v2746_v1 }
 0x4ee   :  { %v1009_v5 = vpop.f32.mrf.mxu0  ;;  %v1050_v60 = vpop.f32.mrf.mxu1 }
 0x4ef   :  { %v1056_v62 = vadd.f32 %v1009_v5, %v2395_v0 }
 0x4f0   :  { %v1011_v58 = vpop.f32.mrf.mxu0  ;;  %v1816_v8 = vpop.f32.mrf.mxu1 }
 0x4f1   :  { %v1584_v29 = vmul.f32 -1.442695, %v1056_v62  ;;  %v1063_v56 = vadd.f32 %v1011_v58, %v2397_v3 }
 0x4f2   :  { %v1013_v14 = vpop.f32.mrf.mxu0  ;;  %v1053_v15 = vpop.f32.mrf.mxu1 }
 0x4f3   :  { %2018 = vpow2.f32 %v1584_v29  ;;  %v1585_v16 = vmul.f32 -1.442695, %v1063_v56 }
 0x4f4   :  { %v1014_v19 = vpop.f32.mrf.mxu0  ;;  %v1817_v17 = vpop.f32.mrf.mxu1 }
 0x4f5   :  { %2020 = vpow2.f32 %v1585_v16 }
 0x500   :  { %v2019_v20 = vpop.eup %2018 }
 0x501   :  { %v1060_v21 = vadd.f32 1.0, %v2019_v20 }
 0x502   :  { %v2021_v23 = vpop.eup %2020 }
 0x503   :  { %2022 = vrcp.f32 %v1060_v21  ;;  %v1067_v57 = vadd.f32 1.0, %v2021_v23  ;;  %v2058_v23 = vld [vmem:[%s2735_s2 + $0xa8] ss:$12 sps:$4 sm:$0xff]  }
 0x505   :  { %2024 = vrcp.f32 %v1067_v57  ;;  %v2060_v57 = vld [vmem:[%s2735_s2 + $0x90] ss:$12 sps:$4 sm:$0xff]  }
 0x510   :  { %v2023_v27 = vpop.eup %2022 }
 0x511   :  { %v1070_v31 = vmul.f32 %v2023_v27, %v1050_v60 }
 0x512   :  { %v2025_v44 = vpop.eup %2024 }
 0x513   :  { %v1071_v0 = vadd.f32 %v1070_v31, %v2417_v13  ;;  %v1073_v59 = vsub.f32 1.0, %v2025_v44  ;;  %v1075_v55 = vmul.f32 %v2025_v44, %v2552_v63 }
 0x515   :  { %2026 = vtanh.f32 %v1071_v0 }
 0x522   :  { %v2027_v61 = vpop.eup %2026 }
 0x523   :  { %v1074_v52 = vmul.f32 %v2027_v61, %v1073_v59  ;;  %v1970_v61 = vld [vmem:[%s2736_s3 + $0x38] sm:$0xff]  }
 0x525   :  { %v2595_v3 = vadd.f32 %v1075_v55, %v1074_v52  ;;  %v1972_v52 = vld [vmem:[%s2736_s3 + $0x28] sm:$0xff]   ;;  %v1973_v55 = vld [vmem:[%s2736_s3 + $0x20] sm:$0xff]  }
 0x527   :  { %v1081_v36 = vpack.c.bf16 %v2595_v3, %v2595_v3 }
 0x529   :  { %1115 = vmatmul.mubr.bf16.vlgmr.msra.gmra.mxu0 %v1081_v36  ;;  %1835 = vmatmul.mubr.bf16.vlgmr.msra.gmra.mxu1 %v1081_v36  ;;  %v1975_v36 = vld [vmem:[%s2736_s3 + $0x10] sm:$0xff]  }
 0x52a   :  { %1190 = vmatpush1.bf16.msra.mxu0 %v2179_v25  ;;  %1839 = vmatpush3.bf16.msra.mxu1 %v2224_v34 }
 0x52b   :  { %1191 = vmatprep.subr.bf16.mxu0 %v2184_v26  ;;  %1840 = vmatprep.subr.bf16.mxu1 %v2746_v1 }
 0x52c   :  { %1221 = vmatprep.mubr.bf16.mxu0 %v2747_v2  ;;  %1854 = vmatprep.mubr.msk.bf16.mxu1 %vm2064_vm0, %v2746_v1 }
 0x52e   :  { %1192 = vmatpush1.bf16.msra.mxu0 %v2193_v28  ;;  %1841 = vmatpush3.bf16.msra.mxu1 %v2247_v39 }
 0x52f   :  { %1193 = vmatprep.subr.bf16.mxu0 %v2204_v30  ;;  %1842 = vmatprep.subr.bf16.mxu1 %v2746_v1 }
 0x532   :  { %1194 = vmatpush1.bf16.msra.mxu0 %v2213_v32  ;;  %1843 = vmatpush3.bf16.msra.mxu1 %v2266_v42 }
 0x533   :  { %1195 = vmatprep.subr.bf16.mxu0 %v2219_v33  ;;  %1844 = vmatprep.subr.bf16.mxu1 %v2746_v1 }
 0x536   :  { %1196 = vmatpush1.bf16.msra.mxu0 %v2230_v35  ;;  %1845 = vmatpush3.bf16.msra.mxu1 %v2289_v46 }
 0x537   :  { %1197 = vmatprep.subr.bf16.mxu0 %v2240_v37  ;;  %1846 = vmatprep.subr.bf16.mxu1 %v2746_v1 }
 0x53a   :  { %1198 = vmatpush1.bf16.msra.mxu0 %v2253_v40  ;;  %1847 = vmatpush3.bf16.msra.mxu1 %v2310_v49 }
 0x53b   :  { %1199 = vmatprep.subr.bf16.mxu0 %v2260_v41  ;;  %1848 = vmatprep.subr.bf16.mxu1 %v2746_v1 }
 0x53e   :  { %1200 = vmatpush1.bf16.msra.mxu0 %v2272_v43  ;;  %1849 = vmatpush3.bf16.msra.mxu1 %v2325_v51 }
 0x53f   :  { %1201 = vmatprep.subr.bf16.mxu0 %v2282_v45  ;;  %1850 = vmatprep.subr.bf16.mxu1 %v2746_v1 }
 0x542   :  { %1202 = vmatpush1.bf16.msra.mxu0 %v2297_v47  ;;  %1851 = vmatpush3.bf16.msra.mxu1 %v2334_v53 }
 0x543   :  { %1203 = vmatprep.subr.bf16.mxu0 %v2304_v48  ;;  %1852 = vmatprep.subr.bf16.mxu1 %v2746_v1 }
 0x546   :  { %1204 = vmatpush1.bf16.msra.mxu0 %v2316_v50  ;;  %1853 = vmatpush3.bf16.msra.mxu1 %v2344_v54 }
 0x547   :  { %1296 = vmatprep.subr.bf16.mxu0 %v2174_v24  ;;  %1858 = vmatprep.subr.bf16.mxu1 %v2746_v1 }
 0x5e9   :  { %v1116_v25 = vpop.f32.mrf.mxu0  ;;  %v1157_v26 = vpop.f32.mrf.mxu1 }
 0x5ea   :  { %v1163_v28 = vadd.f32 %v1116_v25, %v2399_v4  ;;  %v1976_v25 = vld [vmem:[%s2736_s3 + $0x8] sm:$0xff]  }
 0x5eb   :  { %v1118_v30 = vpop.f32.mrf.mxu0  ;;  %v1836_v13 = vpop.f32.mrf.mxu1 }
 0x5ec   :  { %v1586_v38 = vmul.f32 -1.442695, %v1163_v28  ;;  %v1170_v60 = vadd.f32 %v1118_v30, %v2403_v6 }
 0x5ed   :  { %v1120_v12 = vpop.f32.mrf.mxu0  ;;  %v1160_v63 = vpop.f32.mrf.mxu1 }
 0x5ee   :  { %2028 = vpow2.f32 %v1586_v38  ;;  %v1587_v62 = vmul.f32 -1.442695, %v1170_v60 }
 0x5ef   :  { %v1121_v18 = vpop.f32.mrf.mxu0  ;;  %v1837_v5 = vpop.f32.mrf.mxu1 }
 0x5f0   :  { %2030 = vpow2.f32 %v1587_v62 }
 0x5fb   :  { %v2029_v58 = vpop.eup %2028 }
 0x5fc   :  { %v1167_v24 = vadd.f32 1.0, %v2029_v58  ;;  %v2748_v58 = vld [vmem:[#allocation4_spill] sm:$0xff] }
 0x5fd   :  { %v2031_v8 = vpop.eup %2030 }
 0x5fe   :  { %2032 = vrcp.f32 %v1167_v24  ;;  %v1174_v29 = vadd.f32 1.0, %v2031_v8 }
 0x600   :  { %2034 = vrcp.f32 %v1174_v29 }
 0x60b   :  { %v2033_v14 = vpop.eup %2032 }
 0x60c   :  { %v1177_v15 = vmul.f32 %v2033_v14, %v1157_v26  ;;  %v1977_v26 = vld [vmem:[%s2736_s3] sm:$0xff]  }
 0x60d   :  { %v2035_v19 = vpop.eup %2034 }
 0x60e   :  { %v1178_v4 = vadd.f32 %v1177_v15, %v2421_v22  ;;  %v1180_v17 = vsub.f32 1.0, %v2035_v19  ;;  %v1182_v20 = vmul.f32 %v2035_v19, %v2595_v3  ;;  %v2059_v22 = vld [vmem:[%s2735_s2 + $0x94] ss:$12 sps:$4 sm:$0xff]   ;;  %v1974_v3 = vld [vmem:[%s2736_s3 + $0x18] sm:$0xff]  }
 0x610   :  { %2036 = vtanh.f32 %v1178_v4 }
 0x61d   :  { %v2037_v56 = vpop.eup %2036 }
 0x61e   :  { %v1181_v16 = vmul.f32 %v2037_v56, %v1180_v17 }
 0x620   :  { %v2638_v6 = vadd.f32 %v1182_v20, %v1181_v16 }
 0x622   :  { %v1188_v21 = vpack.c.bf16 %v2638_v6, %v2638_v6 }
 0x624   :  { %1222 = vmatmul.mubr.bf16.vlgmr.msra.gmra.mxu0 %v1188_v21  ;;  %1855 = vmatmul.mubr.bf16.vlgmr.msra.gmra.mxu1 %v1188_v21 }
 0x625   :  { %1297 = vmatpush1.bf16.msra.mxu0 %v2058_v23  ;;  %1859 = vmatpush3.bf16.msra.mxu1 %v2224_v34  ;;  %v2061_v34 = vld [vmem:[%s2735_s2 + $0x7c] ss:$12 sps:$4 sm:$0xff]  }
 0x626   :  { %1298 = vmatprep.subr.bf16.mxu0 %v2059_v22  ;;  %1860 = vmatprep.subr.bf16.mxu1 %v2746_v1 }
 0x627   :  { %1328 = vmatprep.mubr.bf16.mxu0 %v2747_v2  ;;  %1874 = vmatprep.mubr.msk.bf16.mxu1 %vm2064_vm0, %v2746_v1 }
 0x629   :  { %1299 = vmatpush1.bf16.msra.mxu0 %v2060_v57  ;;  %1861 = vmatpush3.bf16.msra.mxu1 %v2247_v39  ;;  %v1592_v57 = vld [vmem:[%s2738_s4] ss:$0 sm:$0xff] }
 0x62a   :  { %1300 = vmatprep.subr.bf16.mxu0 %v2061_v34  ;;  %1862 = vmatprep.subr.bf16.mxu1 %v2746_v1 }
 0x62d   :  { %1301 = vmatpush1.bf16.msra.mxu0 %v2213_v32  ;;  %1863 = vmatpush3.bf16.msra.mxu1 %v2266_v42 }
 0x62e   :  { %1302 = vmatprep.subr.bf16.mxu0 %v2219_v33  ;;  %1864 = vmatprep.subr.bf16.mxu1 %v2746_v1 }
 0x631   :  { %1303 = vmatpush1.bf16.msra.mxu0 %v2230_v35  ;;  %1865 = vmatpush3.bf16.msra.mxu1 %v2289_v46 }
 0x632   :  { %1304 = vmatprep.subr.bf16.mxu0 %v2240_v37  ;;  %1866 = vmatprep.subr.bf16.mxu1 %v2746_v1 }
 0x635   :  { %1305 = vmatpush1.bf16.msra.mxu0 %v2253_v40  ;;  %1867 = vmatpush3.bf16.msra.mxu1 %v2310_v49 }
 0x636   :  { %1306 = vmatprep.subr.bf16.mxu0 %v2260_v41  ;;  %1868 = vmatprep.subr.bf16.mxu1 %v2746_v1 }
 0x639   :  { %1307 = vmatpush1.bf16.msra.mxu0 %v2272_v43  ;;  %1869 = vmatpush3.bf16.msra.mxu1 %v2325_v51 }
 0x63a   :  { %1308 = vmatprep.subr.bf16.mxu0 %v2282_v45  ;;  %1870 = vmatprep.subr.bf16.mxu1 %v2746_v1 }
 0x63d   :  { %1309 = vmatpush1.bf16.msra.mxu0 %v2297_v47  ;;  %1871 = vmatpush3.bf16.msra.mxu1 %v2334_v53 }
 0x63e   :  { %1310 = vmatprep.subr.bf16.mxu0 %v2304_v48  ;;  %1872 = vmatprep.subr.bf16.mxu1 %v2746_v1 }
 0x641   :  { %1311 = vmatpush1.bf16.msra.mxu0 %v2316_v50  ;;  %1873 = vmatpush3.bf16.msra.mxu1 %v2344_v54 }
 0x642   :  { %1878 = vmatprep.subr.bf16.mxu0 %v2746_v1 }
 0x6e4   :  { %v1223_v32 = vpop.f32.mrf.mxu0  ;;  %v1264_v33 = vpop.f32.mrf.mxu1 }
 0x6e5   :  { %v1270_v35 = vadd.f32 %v1223_v32, %v2405_v7 }
 0x6e6   :  { %v1225_v37 = vpop.f32.mrf.mxu0  ;;  %v1856_v39 = vpop.f32.mrf.mxu1 }
 0x6e7   :  { %v1588_v40 = vmul.f32 -1.442695, %v1270_v35  ;;  %v1277_v46 = vadd.f32 %v1225_v37, %v2409_v9 }
 0x6e8   :  { %v1227_v41 = vpop.f32.mrf.mxu0  ;;  %v1267_v42 = vpop.f32.mrf.mxu1 }
 0x6e9   :  { %2038 = vpow2.f32 %v1588_v40  ;;  %v1589_v47 = vmul.f32 -1.442695, %v1277_v46 }
 0x6ea   :  { %v1228_v43 = vpop.f32.mrf.mxu0  ;;  %v1857_v45 = vpop.f32.mrf.mxu1 }
 0x6eb   :  { %2040 = vpow2.f32 %v1589_v47 }
 0x6f6   :  { %v2039_v48 = vpop.eup %2038 }
 0x6f7   :  { %v1274_v49 = vadd.f32 1.0, %v2039_v48 }
 0x6f8   :  { %v2041_v50 = vpop.eup %2040 }
 0x6f9   :  { %2042 = vrcp.f32 %v1274_v49  ;;  %v1281_v51 = vadd.f32 1.0, %v2041_v50 }
 0x6fb   :  { %2044 = vrcp.f32 %v1281_v51 }
 0x706   :  { %v2043_v53 = vpop.eup %2042 }
 0x707   :  { %v1284_v54 = vmul.f32 %v2043_v53, %v1264_v33 }
 0x708   :  { %v2045_v2 = vpop.eup %2044 }
 0x709   :  { %v1285_v7 = vadd.f32 %v2411_v10, %v1284_v54  ;;  %v1287_v27 = vsub.f32 1.0, %v2045_v2  ;;  %v1289_v44 = vmul.f32 %v2045_v2, %v2638_v6  ;;  %v1971_v10 = vld [vmem:[%s2736_s3 + $0x30] sm:$0xff]  }
 0x70b   :  { %2046 = vtanh.f32 %v1285_v7 }
 0x718   :  { %v2047_v31 = vpop.eup %2046 }
 0x719   :  { %v1288_v0 = vmul.f32 %v2047_v31, %v1287_v27 }
 0x71b   :  { %v1290_v9 = vadd.f32 %v1289_v44, %v1288_v0 }
 0x71d   :  { %v1295_v59 = vpack.c.bf16 %v1290_v9, %v1290_v9 }
 0x71f   :  { %1329 = vmatmul.mubr.bf16.vlgmr.msra.gmra.mxu0 %v1295_v59  ;;  %1875 = vmatmul.mubr.bf16.vlgmr.msra.gmra.mxu1 %v1295_v59 }
 0x720   :  { %1894 = vmatprep.mubr.msk.bf16.mxu0 %vm2064_vm0, %v2746_v1  ;;  %1879 = vmatpush3.bf16.msra.mxu0 %v1970_v61 }
 0x721   :  { %1880 = vmatprep.subr.bf16.mxu0 %v2746_v1 }
 0x724   :  { %1881 = vmatpush3.bf16.msra.mxu0 %v1971_v10 }
 0x725   :  { %1882 = vmatprep.subr.bf16.mxu0 %v2746_v1 }
 0x728   :  { %1883 = vmatpush3.bf16.msra.mxu0 %v1972_v52 }
 0x729   :  { %1884 = vmatprep.subr.bf16.mxu0 %v2746_v1 }
 0x72c   :  { %1885 = vmatpush3.bf16.msra.mxu0 %v1973_v55 }
 0x72d   :  { %1886 = vmatprep.subr.bf16.mxu0 %v2746_v1 }
 0x730   :  { %1887 = vmatpush3.bf16.msra.mxu0 %v1974_v3 }
 0x731   :  { %1888 = vmatprep.subr.bf16.mxu0 %v2746_v1 }
 0x734   :  { %1889 = vmatpush3.bf16.msra.mxu0 %v1975_v36 }
 0x735   :  { %1890 = vmatprep.subr.bf16.mxu0 %v2746_v1 }
 0x738   :  { %1891 = vmatpush3.bf16.msra.mxu0 %v1976_v25 }
 0x739   :  { %1892 = vmatprep.subr.bf16.mxu0 %v2746_v1 }
 0x73c   :  { %1893 = vmatpush3.bf16.msra.mxu0 %v1977_v26 }
 0x7df   :  { %v1330_v28 = vpop.f32.mrf.mxu0  ;;  %v1371_v30 = vpop.f32.mrf.mxu1 }
 0x7e0   :  { %v1377_v13 = vadd.f32 %v1330_v28, %v2413_v11  ;;  %v2749_v11 = vld [vmem:[#allocation5_spill] sm:$0xff] }
 0x7e1   :  { %v1332_v38 = vpop.f32.mrf.mxu0  ;;  %v1876_v12 = vpop.f32.mrf.mxu1 }
 0x7e2   :  { %v1590_v63 = vmul.f32 -1.442695, %v1377_v13  ;;  %v1384_v24 = vadd.f32 %v1332_v38, %v2748_v58 }
 0x7e3   :  { %v1334_v18 = vpop.f32.mrf.mxu0  ;;  %v1374_v5 = vpop.f32.mrf.mxu1 }
 0x7e4   :  { %2048 = vpow2.f32 %v1590_v63  ;;  %v1591_v8 = vmul.f32 -1.442695, %v1384_v24 }
 0x7e5   :  { %v1335_v60 = vpop.f32.mrf.mxu0  ;;  %v1877_v62 = vpop.f32.mrf.mxu1 }
 0x7e6   :  { %2050 = vpow2.f32 %v1591_v8 }
 0x7f1   :  { %v2049_v29 = vpop.eup %2048 }
 0x7f2   :  { %v1381_v14 = vadd.f32 1.0, %v2049_v29 }
 0x7f3   :  { %v2051_v1 = vpop.eup %2050 }
 0x7f4   :  { %2052 = vrcp.f32 %v1381_v14  ;;  %v1388_v15 = vadd.f32 1.0, %v2051_v1 }
 0x7f6   :  { %2054 = vrcp.f32 %v1388_v15 }
 0x801   :  { %v2053_v4 = vpop.eup %2052 }
 0x802   :  { %v1391_v19 = vmul.f32 %v2053_v4, %v1371_v30 }
 0x803   :  { %v2055_v56 = vpop.eup %2054 }
 0x804   :  { %v1392_v17 = vadd.f32 %v2749_v11, %v1391_v19  ;;  %v1394_v16 = vsub.f32 1.0, %v2055_v56  ;;  %v1396_v21 = vmul.f32 %v2055_v56, %v1290_v9 }
 0x806   :  { %2056 = vtanh.f32 %v1392_v17 }
 0x813   :  { %v2057_v20 = vpop.eup %2056 }
 0x814   :  { %v1395_v6 = vmul.f32 %v2057_v20, %v1394_v16 }
 0x816   :  { %v1397_v23 = vadd.f32 %v1396_v21, %v1395_v6 }
 0x818   :  { %1402 = vst [vmem:[%s2737_s6] sm:$0xff] %v1397_v23  ;;  %v1403_v22 = vpack.c.bf16 %v1397_v23, %v1397_v23 }
 0x81a   :  { %1895 = vmatmul.mubr.bf16.vlgmr.msra.gmra.mxu0 %v1403_v22 }
 0x8da   :  { %v1509_v34 = vpop.f32.mrf.mxu0 }
 0x8db   :  { %v1510_v32 = vadd.f32 %v1592_v57, %v1509_v34 }
 0x8dc   :  { %v1896_v33 = vpop.f32.mrf.mxu0 }
 0x8dd   :  { %1515 = vst [vmem:[%s2739_s5] sm:$0xff] %v1510_v32 }
 0x8de   :  { %v1512_v35 = vpop.f32.mrf.mxu0 }
 0x8e0   :  { %v1897_v37 = vpop.f32.mrf.mxu0 }

</bundles_post_ra>
